<compile_context>
chip_gen: v7x
topology: tpu7x:2x2x1
jax: 0.10.0
libtpu: 0.0.40
codegen_flags: <defaults>
</compile_context>

<pallas_src>
import functools

import jax
import jax.numpy as jnp
from jax import lax
from jax.experimental import pallas as pl
from jax.experimental.pallas import tpu as pltpu


def aerpp_kernel(gx_ref, mask_ref,
                 whh_ref, wattn_ref, battn_ref,
                 wmlp_ref, bmlp_ref,
                 wev_ref, bev_ref,
                 wtm_ref, btm_ref,
                 time_out_ref, logsm_ref):
    T, B, _ = gx_ref.shape          # gx: [T, B, 4H] (input projection already applied)
    H = whh_ref.shape[0]            # whh: [H, 4H]   (contraction-major)
    C = wattn_ref.shape[1]          # wattn: [H, C]
    M = wmlp_ref.shape[1]           # wmlp: [H, M]

    whh = whh_ref[...]              # hoisted weight / bias loads
    wattn = wattn_ref[...]
    battn = battn_ref[...]          # [1, C]

    h = jnp.zeros((B, H), jnp.float32)
    c = jnp.zeros((B, H), jnp.float32)
    attn_acc = jnp.zeros((B, C, H), jnp.float32)   # fused attn_applied accumulator

    # ---- fully-unrolled LSTM recurrence (torch gate order i, f, g, o) with fused attention ----
    for t in range(T):
        gates = gx_ref[t] + jnp.dot(h, whh, preferred_element_type=jnp.float32)   # [B, 4H]
        i_g = jax.nn.sigmoid(gates[:, 0:H])
        f_g = jax.nn.sigmoid(gates[:, H:2 * H])
        g_g = jnp.tanh(gates[:, 2 * H:3 * H])
        o_g = jax.nn.sigmoid(gates[:, 3 * H:4 * H])
        c = f_g * c + i_g * g_g
        h = o_g * jnp.tanh(c)
        # pack_padded / pad_packed semantics: padded timesteps emit zero output rows.
        h_m = h * mask_ref[t]                                                      # [B, H]
        # attention weight for this step and rank-1 update of attn_applied
        aw_t = jnp.abs(jnp.tanh(
            jnp.dot(h_m, wattn, preferred_element_type=jnp.float32) + battn))      # [B, C]
        attn_acc = attn_acc + aw_t[:, :, None] * h_m[:, None, :]                   # [B, C, H]

    # ---- output_mlp = sigmoid(Linear_H->M(attn_applied)) ----
    mlp_flat = jax.nn.sigmoid(
        jnp.dot(attn_acc.reshape(B * C, H), wmlp_ref[...],
                preferred_element_type=jnp.float32) + bmlp_ref[...])               # [B*C, M]
    output_mlp = mlp_flat.reshape(B, C, M)

    # ---- event head + log_softmax over classes (dim=1) ----
    ev = jnp.sum(output_mlp * wev_ref[...].reshape(1, 1, M), axis=-1) + bev_ref[...]  # [B, C]
    maxv = jnp.max(ev, axis=1, keepdims=True)
    lse = jnp.log(jnp.sum(jnp.exp(ev - maxv), axis=1, keepdims=True)) + maxv
    logsm_ref[...] = ev - lse

    # ---- argmax over classes (first-max, torch semantics) + one-hot gather ----
    iota_c = lax.broadcasted_iota(jnp.int32, (B, C), 1)
    sel_idx = jnp.min(jnp.where(ev == maxv, iota_c, C), axis=1, keepdims=True)      # [B, 1]
    onehot = (iota_c == sel_idx).astype(jnp.float32)                                # [B, C]
    sel_mlp = jnp.sum(onehot[:, :, None] * output_mlp, axis=1)                      # [B, M]

    # ---- time head ----
    time_out_ref[...] = (jnp.sum(sel_mlp * wtm_ref[...], axis=-1, keepdims=True)
                         + btm_ref[...])                                            # [B, 1]


def aerpp_forward(times, events, lengths, params):
    """times: [B,T] f32, events: [B,T] int, lengths: [B] int (sorted desc)."""
    B, T = events.shape
    C = params["w_attn"].shape[0]

    # Hoisted input projection (glue, plain JAX):
    #   gates_x[b,t,:] = time * W_ih[:,0] + W_ih[:, event+1] + (b_ih + b_hh)
    w_ih_t = params["w_ih"].T                                    # [D, 4H], D = C+1
    gx = (times[..., None] * w_ih_t[0]
          + jnp.take(w_ih_t[1:], events, axis=0)
          + params["b_lstm"][0])                                 # [B, T, 4H]
    gx_tm = jnp.transpose(gx, (1, 0, 2))                         # [T, B, 4H] time-major

    # Precomputed padding mask for every step.
    mask_tm = (jnp.arange(T)[:, None] < lengths[None, :]).astype(jnp.float32)[..., None]  # [T,B,1]

    args = (gx_tm, mask_tm,
            params["w_hh"].T,                                    # [H, 4H]
            params["w_attn"].T, params["b_attn"],                # [H, C], [1, C]
            params["w_mlp"].T, params["b_mlp"],                  # [H, M], [1, M]
            params["w_event"], params["b_event"],                # [1, M], [1, 1]
            params["w_time"], params["b_time"])                  # [1, M], [1, 1]

    vmem = functools.partial(pl.BlockSpec, memory_space=pltpu.MemorySpace.VMEM)
    time_out, logsm = pl.pallas_call(
        aerpp_kernel,
        out_shape=(jax.ShapeDtypeStruct((B, 1), jnp.float32),
                   jax.ShapeDtypeStruct((B, C), jnp.float32)),
        in_specs=[vmem() for _ in args],
        out_specs=(vmem(), vmem()),
    )(*args)
    return time_out, logsm


def aerpp_reference(times, events, lengths, params):
    """Pure-JAX reference of the PyTorch forward (embedding_dims=0, lstm_layers=1)."""
    B, T = events.shape
    C = params["w_attn"].shape[0]
    H = params["w_hh"].shape[1]
    one_hot = jax.nn.one_hot(events, C, dtype=jnp.float32)
    x = jnp.concatenate([times[..., None], one_hot], axis=-1)     # [B, T, D]
    wih, whh, bl = params["w_ih"], params["w_hh"], params["b_lstm"][0]
    h = jnp.zeros((B, H), jnp.float32)
    c = jnp.zeros((B, H), jnp.float32)
    outs = []
    for t in range(T):
        g = x[:, t, :] @ wih.T + h @ whh.T + bl
        i = jax.nn.sigmoid(g[:, :H])
        f = jax.nn.sigmoid(g[:, H:2 * H])
        gg = jnp.tanh(g[:, 2 * H:3 * H])
        o = jax.nn.sigmoid(g[:, 3 * H:])
        c = f * c + i * gg
        h = o * jnp.tanh(c)
        mask = (lengths.astype(jnp.float32) > t).astype(jnp.float32)[:, None]
        outs.append(h * mask)
    out = jnp.stack(outs, axis=1)                                 # [B, T, H]
    aw = jnp.abs(jnp.tanh(out @ params["w_attn"].T + params["b_attn"][0]))   # [B, T, C]
    attn_applied = jnp.einsum('btc,bth->bch', aw, out)
    mlp = jax.nn.sigmoid(attn_applied @ params["w_mlp"].T + params["b_mlp"][0])
    ev = mlp @ params["w_event"][0] + params["b_event"][0, 0]
    logsm = jax.nn.log_softmax(ev, axis=1)
    sel = jnp.argmax(logsm, axis=1)
    sel_mlp = jnp.take_along_axis(mlp, sel[:, None, None], axis=1)[:, 0, :]
    time_out = sel_mlp @ params["w_time"][0] + params["b_time"][0, 0]
    return time_out[:, None], logsm


def init_params(key, C, H, M):
    D = C + 1
    ks = jax.random.split(key, 12)

    def u(k, shape, fan_in):
        bound = 1.0 / float(fan_in) ** 0.5
        return jax.random.uniform(k, shape, jnp.float32, -bound, bound)

    return {
        "w_ih": u(ks[0], (4 * H, D), H),
        "w_hh": u(ks[1], (4 * H, H), H),
        "b_lstm": u(ks[2], (1, 4 * H), H) + u(ks[3], (1, 4 * H), H),   # b_ih + b_hh
        "w_attn": u(ks[4], (C, H), H),
        "b_attn": u(ks[5], (1, C), H),
        "w_mlp": u(ks[6], (M, H), H),
        "b_mlp": u(ks[7], (1, M), H),
        "w_event": u(ks[8], (1, M), M),
        "b_event": u(ks[9], (1, 1), M),
        "w_time": u(ks[10], (1, M), M),
        "b_time": u(ks[11], (1, 1), M),
    }


if __name__ == "__main__":
    B, T = 2, 8
    C, H, M = 8, 32, 16          # event_classes, lstm_hidden_unit_dims, mlp_dims

    key = jax.random.PRNGKey(0)
    kp, kt, ke = jax.random.split(key, 3)
    params = init_params(kp, C, H, M)

    # Synthetic "input" tensor semantics: channel 0 = time (float), channel 1 = event id (int).
    times = jax.random.uniform(kt, (B, T), jnp.float32)
    events = jax.random.randint(ke, (B, T), 0, C)
    lengths = jnp.array([T, T - 2], dtype=jnp.int32)   # sorted descending (pack_padded_sequence)

    time_out, logsm = aerpp_forward(times, events, lengths, params)
    jax.block_until_ready((time_out, logsm))

    t_ref, l_ref = aerpp_reference(times, events, lengths, params)
    assert time_out.shape == (B, 1) and logsm.shape == (B, C)
    assert jnp.allclose(time_out, t_ref, atol=5e-5, rtol=5e-5)
    assert jnp.allclose(logsm, l_ref, atol=5e-5, rtol=5e-5)

    print("KERNEL_OK")
</pallas_src>

<mosaic_0001>
module attributes {stable_mosaic.version = 11 : i64} {
  func.func @aerpp_kernel(%arg0: memref<8x2x128xf32, #tpu.memory_space<vmem>>, %arg1: memref<8x2x1xf32, #tpu.memory_space<vmem>>, %arg2: memref<32x128xf32, #tpu.memory_space<vmem>>, %arg3: memref<32x8xf32, #tpu.memory_space<vmem>>, %arg4: memref<1x8xf32, #tpu.memory_space<vmem>>, %arg5: memref<32x16xf32, #tpu.memory_space<vmem>>, %arg6: memref<1x16xf32, #tpu.memory_space<vmem>>, %arg7: memref<1x16xf32, #tpu.memory_space<vmem>>, %arg8: memref<1x1xf32, #tpu.memory_space<vmem>>, %arg9: memref<1x16xf32, #tpu.memory_space<vmem>>, %arg10: memref<1x1xf32, #tpu.memory_space<vmem>>, %arg11: memref<2x1xf32, #tpu.memory_space<vmem>>, %arg12: memref<2x8xf32, #tpu.memory_space<vmem>>) attributes {dimension_semantics = [], scalar_prefetch = 0 : i64, scratch_operands = 0 : i64, tpu.core_type = #tpu.core_type<tc>} {
    %c0 = arith.constant 0 : index
    %c0_0 = arith.constant 0 : index
    %0 = vector.load %arg2[%c0, %c0_0] : memref<32x128xf32, #tpu.memory_space<vmem>>, vector<32x128xf32>
    %c0_1 = arith.constant 0 : index
    %c0_2 = arith.constant 0 : index
    %1 = vector.load %arg3[%c0_1, %c0_2] : memref<32x8xf32, #tpu.memory_space<vmem>>, vector<32x8xf32>
    %c0_3 = arith.constant 0 : index
    %c0_4 = arith.constant 0 : index
    %2 = vector.load %arg4[%c0_3, %c0_4] : memref<1x8xf32, #tpu.memory_space<vmem>>, vector<1x8xf32>
    %cst = arith.constant 0.000000e+00 : f32
    %3 = vector.broadcast %cst : f32 to vector<2x32xf32>
    %cst_5 = arith.constant 0.000000e+00 : f32
    %4 = vector.broadcast %cst_5 : f32 to vector<2x32xf32>
    %cst_6 = arith.constant 0.000000e+00 : f32
    %5 = vector.broadcast %cst_6 : f32 to vector<2x8x32xf32>
    %c0_7 = arith.constant 0 : index
    %c0_8 = arith.constant 0 : index
    %c0_9 = arith.constant 0 : index
    %6 = vector.load %arg0[%c0_7, %c0_8, %c0_9] : memref<8x2x128xf32, #tpu.memory_space<vmem>>, vector<1x2x128xf32>
    %7 = vector.shape_cast %6 : vector<1x2x128xf32> to vector<2x128xf32>
    %cst_10 = arith.constant dense<0.000000e+00> : vector<2x128xf32>
    %8 = tpu.matmul %3, %0, %cst_10 {dimension_numbers = #tpu.dot_dimension_numbers<[1], [0], [0], [1], [0, 0, 1, 1], [], []>} : vector<2x32xf32>, vector<32x128xf32>, vector<2x128xf32> -> vector<2x128xf32>
    %9 = arith.addf %7, %8 : vector<2x128xf32>
    %10 = vector.extract_strided_slice %9 {offsets = [0, 0], sizes = [2, 32], strides = [1, 1]} : vector<2x128xf32> to vector<2x32xf32>
    %11 = arith.negf %10 : vector<2x32xf32>
    %12 = math.exp %11 : vector<2x32xf32>
    %cst_11 = arith.constant 1.000000e+00 : f32
    %13 = vector.broadcast %cst_11 : f32 to vector<2x32xf32>
    %14 = arith.addf %13, %12 : vector<2x32xf32>
    %15 = arith.divf %13, %14 : vector<2x32xf32>
    %16 = vector.extract_strided_slice %9 {offsets = [0, 32], sizes = [2, 32], strides = [1, 1]} : vector<2x128xf32> to vector<2x32xf32>
    %17 = arith.negf %16 : vector<2x32xf32>
    %18 = math.exp %17 : vector<2x32xf32>
    %cst_12 = arith.constant 1.000000e+00 : f32
    %19 = vector.broadcast %cst_12 : f32 to vector<2x32xf32>
    %20 = arith.addf %19, %18 : vector<2x32xf32>
    %21 = arith.divf %19, %20 : vector<2x32xf32>
    %22 = vector.extract_strided_slice %9 {offsets = [0, 64], sizes = [2, 32], strides = [1, 1]} : vector<2x128xf32> to vector<2x32xf32>
    %23 = math.tanh %22 : vector<2x32xf32>
    %24 = vector.extract_strided_slice %9 {offsets = [0, 96], sizes = [2, 32], strides = [1, 1]} : vector<2x128xf32> to vector<2x32xf32>
    %25 = arith.negf %24 : vector<2x32xf32>
    %26 = math.exp %25 : vector<2x32xf32>
    %cst_13 = arith.constant 1.000000e+00 : f32
    %27 = vector.broadcast %cst_13 : f32 to vector<2x32xf32>
    %28 = arith.addf %27, %26 : vector<2x32xf32>
    %29 = arith.divf %27, %28 : vector<2x32xf32>
    %30 = arith.mulf %21, %4 : vector<2x32xf32>
    %31 = arith.mulf %15, %23 : vector<2x32xf32>
    %32 = arith.addf %30, %31 : vector<2x32xf32>
    %33 = math.tanh %32 : vector<2x32xf32>
    %34 = arith.mulf %29, %33 : vector<2x32xf32>
    %c0_14 = arith.constant 0 : index
    %c0_15 = arith.constant 0 : index
    %c0_16 = arith.constant 0 : index
    %35 = vector.load %arg1[%c0_14, %c0_15, %c0_16] : memref<8x2x1xf32, #tpu.memory_space<vmem>>, vector<1x2x1xf32>
    %36 = vector.shape_cast %35 : vector<1x2x1xf32> to vector<2x1xf32>
    %37 = vector.broadcast %36 : vector<2x1xf32> to vector<2x32xf32>
    %38 = arith.mulf %34, %37 : vector<2x32xf32>
    %cst_17 = arith.constant dense<0.000000e+00> : vector<2x8xf32>
    %39 = tpu.matmul %38, %1, %cst_17 {dimension_numbers = #tpu.dot_dimension_numbers<[1], [0], [0], [1], [0, 0, 1, 1], [], []>} : vector<2x32xf32>, vector<32x8xf32>, vector<2x8xf32> -> vector<2x8xf32>
    %40 = vector.broadcast %2 : vector<1x8xf32> to vector<2x8xf32>
    %41 = arith.addf %39, %40 : vector<2x8xf32>
    %42 = math.tanh %41 : vector<2x8xf32>
    %43 = math.absf %42 : vector<2x8xf32>
    %44 = vector.shape_cast %43 : vector<2x8xf32> to vector<2x8x1xf32>
    %45 = vector.shape_cast %38 : vector<2x32xf32> to vector<2x1x32xf32>
    %46 = vector.broadcast %44 : vector<2x8x1xf32> to vector<2x8x32xf32>
    %47 = vector.broadcast %45 : vector<2x1x32xf32> to vector<2x8x32xf32>
    %48 = arith.mulf %46, %47 : vector<2x8x32xf32>
    %49 = arith.addf %5, %48 : vector<2x8x32xf32>
    %c1 = arith.constant 1 : index
    %c0_18 = arith.constant 0 : index
    %c0_19 = arith.constant 0 : index
    %50 = vector.load %arg0[%c1, %c0_18, %c0_19] : memref<8x2x128xf32, #tpu.memory_space<vmem>>, vector<1x2x128xf32>
    %51 = vector.shape_cast %50 : vector<1x2x128xf32> to vector<2x128xf32>
    %cst_20 = arith.constant dense<0.000000e+00> : vector<2x128xf32>
    %52 = tpu.matmul %34, %0, %cst_20 {dimension_numbers = #tpu.dot_dimension_numbers<[1], [0], [0], [1], [0, 0, 1, 1], [], []>} : vector<2x32xf32>, vector<32x128xf32>, vector<2x128xf32> -> vector<2x128xf32>
    %53 = arith.addf %51, %52 : vector<2x128xf32>
    %54 = vector.extract_strided_slice %53 {offsets = [0, 0], sizes = [2, 32], strides = [1, 1]} : vector<2x128xf32> to vector<2x32xf32>
    %55 = arith.negf %54 : vector<2x32xf32>
    %56 = math.exp %55 : vector<2x32xf32>
    %cst_21 = arith.constant 1.000000e+00 : f32
    %57 = vector.broadcast %cst_21 : f32 to vector<2x32xf32>
    %58 = arith.addf %57, %56 : vector<2x32xf32>
    %59 = arith.divf %57, %58 : vector<2x32xf32>
    %60 = vector.extract_strided_slice %53 {offsets = [0, 32], sizes = [2, 32], strides = [1, 1]} : vector<2x128xf32> to vector<2x32xf32>
    %61 = arith.negf %60 : vector<2x32xf32>
    %62 = math.exp %61 : vector<2x32xf32>
    %cst_22 = arith.constant 1.000000e+00 : f32
    %63 = vector.broadcast %cst_22 : f32 to vector<2x32xf32>
    %64 = arith.addf %63, %62 : vector<2x32xf32>
    %65 = arith.divf %63, %64 : vector<2x32xf32>
    %66 = vector.extract_strided_slice %53 {offsets = [0, 64], sizes = [2, 32], strides = [1, 1]} : vector<2x128xf32> to vector<2x32xf32>
    %67 = math.tanh %66 : vector<2x32xf32>
    %68 = vector.extract_strided_slice %53 {offsets = [0, 96], sizes = [2, 32], strides = [1, 1]} : vector<2x128xf32> to vector<2x32xf32>
    %69 = arith.negf %68 : vector<2x32xf32>
    %70 = math.exp %69 : vector<2x32xf32>
    %cst_23 = arith.constant 1.000000e+00 : f32
    %71 = vector.broadcast %cst_23 : f32 to vector<2x32xf32>
    %72 = arith.addf %71, %70 : vector<2x32xf32>
    %73 = arith.divf %71, %72 : vector<2x32xf32>
    %74 = arith.mulf %65, %32 : vector<2x32xf32>
    %75 = arith.mulf %59, %67 : vector<2x32xf32>
    %76 = arith.addf %74, %75 : vector<2x32xf32>
    %77 = math.tanh %76 : vector<2x32xf32>
    %78 = arith.mulf %73, %77 : vector<2x32xf32>
    %c1_24 = arith.constant 1 : index
    %c0_25 = arith.constant 0 : index
    %c0_26 = arith.constant 0 : index
    %79 = vector.load %arg1[%c1_24, %c0_25, %c0_26] : memref<8x2x1xf32, #tpu.memory_space<vmem>>, vector<1x2x1xf32>
    %80 = vector.shape_cast %79 : vector<1x2x1xf32> to vector<2x1xf32>
    %81 = vector.broadcast %80 : vector<2x1xf32> to vector<2x32xf32>
    %82 = arith.mulf %78, %81 : vector<2x32xf32>
    %cst_27 = arith.constant dense<0.000000e+00> : vector<2x8xf32>
    %83 = tpu.matmul %82, %1, %cst_27 {dimension_numbers = #tpu.dot_dimension_numbers<[1], [0], [0], [1], [0, 0, 1, 1], [], []>} : vector<2x32xf32>, vector<32x8xf32>, vector<2x8xf32> -> vector<2x8xf32>
    %84 = vector.broadcast %2 : vector<1x8xf32> to vector<2x8xf32>
    %85 = arith.addf %83, %84 : vector<2x8xf32>
    %86 = math.tanh %85 : vector<2x8xf32>
    %87 = math.absf %86 : vector<2x8xf32>
    %88 = vector.shape_cast %87 : vector<2x8xf32> to vector<2x8x1xf32>
    %89 = vector.shape_cast %82 : vector<2x32xf32> to vector<2x1x32xf32>
    %90 = vector.broadcast %88 : vector<2x8x1xf32> to vector<2x8x32xf32>
    %91 = vector.broadcast %89 : vector<2x1x32xf32> to vector<2x8x32xf32>
    %92 = arith.mulf %90, %91 : vector<2x8x32xf32>
    %93 = arith.addf %49, %92 : vector<2x8x32xf32>
    %c2 = arith.constant 2 : index
    %c0_28 = arith.constant 0 : index
    %c0_29 = arith.constant 0 : index
    %94 = vector.load %arg0[%c2, %c0_28, %c0_29] : memref<8x2x128xf32, #tpu.memory_space<vmem>>, vector<1x2x128xf32>
    %95 = vector.shape_cast %94 : vector<1x2x128xf32> to vector<2x128xf32>
    %cst_30 = arith.constant dense<0.000000e+00> : vector<2x128xf32>
    %96 = tpu.matmul %78, %0, %cst_30 {dimension_numbers = #tpu.dot_dimension_numbers<[1], [0], [0], [1], [0, 0, 1, 1], [], []>} : vector<2x32xf32>, vector<32x128xf32>, vector<2x128xf32> -> vector<2x128xf32>
    %97 = arith.addf %95, %96 : vector<2x128xf32>
    %98 = vector.extract_strided_slice %97 {offsets = [0, 0], sizes = [2, 32], strides = [1, 1]} : vector<2x128xf32> to vector<2x32xf32>
    %99 = arith.negf %98 : vector<2x32xf32>
    %100 = math.exp %99 : vector<2x32xf32>
    %cst_31 = arith.constant 1.000000e+00 : f32
    %101 = vector.broadcast %cst_31 : f32 to vector<2x32xf32>
    %102 = arith.addf %101, %100 : vector<2x32xf32>
    %103 = arith.divf %101, %102 : vector<2x32xf32>
    %104 = vector.extract_strided_slice %97 {offsets = [0, 32], sizes = [2, 32], strides = [1, 1]} : vector<2x128xf32> to vector<2x32xf32>
    %105 = arith.negf %104 : vector<2x32xf32>
    %106 = math.exp %105 : vector<2x32xf32>
    %cst_32 = arith.constant 1.000000e+00 : f32
    %107 = vector.broadcast %cst_32 : f32 to vector<2x32xf32>
    %108 = arith.addf %107, %106 : vector<2x32xf32>
    %109 = arith.divf %107, %108 : vector<2x32xf32>
    %110 = vector.extract_strided_slice %97 {offsets = [0, 64], sizes = [2, 32], strides = [1, 1]} : vector<2x128xf32> to vector<2x32xf32>
    %111 = math.tanh %110 : vector<2x32xf32>
    %112 = vector.extract_strided_slice %97 {offsets = [0, 96], sizes = [2, 32], strides = [1, 1]} : vector<2x128xf32> to vector<2x32xf32>
    %113 = arith.negf %112 : vector<2x32xf32>
    %114 = math.exp %113 : vector<2x32xf32>
    %cst_33 = arith.constant 1.000000e+00 : f32
    %115 = vector.broadcast %cst_33 : f32 to vector<2x32xf32>
    %116 = arith.addf %115, %114 : vector<2x32xf32>
    %117 = arith.divf %115, %116 : vector<2x32xf32>
    %118 = arith.mulf %109, %76 : vector<2x32xf32>
    %119 = arith.mulf %103, %111 : vector<2x32xf32>
    %120 = arith.addf %118, %119 : vector<2x32xf32>
    %121 = math.tanh %120 : vector<2x32xf32>
    %122 = arith.mulf %117, %121 : vector<2x32xf32>
    %c2_34 = arith.constant 2 : index
    %c0_35 = arith.constant 0 : index
    %c0_36 = arith.constant 0 : index
    %123 = vector.load %arg1[%c2_34, %c0_35, %c0_36] : memref<8x2x1xf32, #tpu.memory_space<vmem>>, vector<1x2x1xf32>
    %124 = vector.shape_cast %123 : vector<1x2x1xf32> to vector<2x1xf32>
    %125 = vector.broadcast %124 : vector<2x1xf32> to vector<2x32xf32>
    %126 = arith.mulf %122, %125 : vector<2x32xf32>
    %cst_37 = arith.constant dense<0.000000e+00> : vector<2x8xf32>
    %127 = tpu.matmul %126, %1, %cst_37 {dimension_numbers = #tpu.dot_dimension_numbers<[1], [0], [0], [1], [0, 0, 1, 1], [], []>} : vector<2x32xf32>, vector<32x8xf32>, vector<2x8xf32> -> vector<2x8xf32>
    %128 = vector.broadcast %2 : vector<1x8xf32> to vector<2x8xf32>
    %129 = arith.addf %127, %128 : vector<2x8xf32>
    %130 = math.tanh %129 : vector<2x8xf32>
    %131 = math.absf %130 : vector<2x8xf32>
    %132 = vector.shape_cast %131 : vector<2x8xf32> to vector<2x8x1xf32>
    %133 = vector.shape_cast %126 : vector<2x32xf32> to vector<2x1x32xf32>
    %134 = vector.broadcast %132 : vector<2x8x1xf32> to vector<2x8x32xf32>
    %135 = vector.broadcast %133 : vector<2x1x32xf32> to vector<2x8x32xf32>
    %136 = arith.mulf %134, %135 : vector<2x8x32xf32>
    %137 = arith.addf %93, %136 : vector<2x8x32xf32>
    %c3 = arith.constant 3 : index
    %c0_38 = arith.constant 0 : index
    %c0_39 = arith.constant 0 : index
    %138 = vector.load %arg0[%c3, %c0_38, %c0_39] : memref<8x2x128xf32, #tpu.memory_space<vmem>>, vector<1x2x128xf32>
    %139 = vector.shape_cast %138 : vector<1x2x128xf32> to vector<2x128xf32>
    %cst_40 = arith.constant dense<0.000000e+00> : vector<2x128xf32>
    %140 = tpu.matmul %122, %0, %cst_40 {dimension_numbers = #tpu.dot_dimension_numbers<[1], [0], [0], [1], [0, 0, 1, 1], [], []>} : vector<2x32xf32>, vector<32x128xf32>, vector<2x128xf32> -> vector<2x128xf32>
    %141 = arith.addf %139, %140 : vector<2x128xf32>
    %142 = vector.extract_strided_slice %141 {offsets = [0, 0], sizes = [2, 32], strides = [1, 1]} : vector<2x128xf32> to vector<2x32xf32>
    %143 = arith.negf %142 : vector<2x32xf32>
    %144 = math.exp %143 : vector<2x32xf32>
    %cst_41 = arith.constant 1.000000e+00 : f32
    %145 = vector.broadcast %cst_41 : f32 to vector<2x32xf32>
    %146 = arith.addf %145, %144 : vector<2x32xf32>
    %147 = arith.divf %145, %146 : vector<2x32xf32>
    %148 = vector.extract_strided_slice %141 {offsets = [0, 32], sizes = [2, 32], strides = [1, 1]} : vector<2x128xf32> to vector<2x32xf32>
    %149 = arith.negf %148 : vector<2x32xf32>
    %150 = math.exp %149 : vector<2x32xf32>
    %cst_42 = arith.constant 1.000000e+00 : f32
    %151 = vector.broadcast %cst_42 : f32 to vector<2x32xf32>
    %152 = arith.addf %151, %150 : vector<2x32xf32>
    %153 = arith.divf %151, %152 : vector<2x32xf32>
    %154 = vector.extract_strided_slice %141 {offsets = [0, 64], sizes = [2, 32], strides = [1, 1]} : vector<2x128xf32> to vector<2x32xf32>
    %155 = math.tanh %154 : vector<2x32xf32>
    %156 = vector.extract_strided_slice %141 {offsets = [0, 96], sizes = [2, 32], strides = [1, 1]} : vector<2x128xf32> to vector<2x32xf32>
    %157 = arith.negf %156 : vector<2x32xf32>
    %158 = math.exp %157 : vector<2x32xf32>
    %cst_43 = arith.constant 1.000000e+00 : f32
    %159 = vector.broadcast %cst_43 : f32 to vector<2x32xf32>
    %160 = arith.addf %159, %158 : vector<2x32xf32>
    %161 = arith.divf %159, %160 : vector<2x32xf32>
    %162 = arith.mulf %153, %120 : vector<2x32xf32>
    %163 = arith.mulf %147, %155 : vector<2x32xf32>
    %164 = arith.addf %162, %163 : vector<2x32xf32>
    %165 = math.tanh %164 : vector<2x32xf32>
    %166 = arith.mulf %161, %165 : vector<2x32xf32>
    %c3_44 = arith.constant 3 : index
    %c0_45 = arith.constant 0 : index
    %c0_46 = arith.constant 0 : index
    %167 = vector.load %arg1[%c3_44, %c0_45, %c0_46] : memref<8x2x1xf32, #tpu.memory_space<vmem>>, vector<1x2x1xf32>
    %168 = vector.shape_cast %167 : vector<1x2x1xf32> to vector<2x1xf32>
    %169 = vector.broadcast %168 : vector<2x1xf32> to vector<2x32xf32>
    %170 = arith.mulf %166, %169 : vector<2x32xf32>
    %cst_47 = arith.constant dense<0.000000e+00> : vector<2x8xf32>
    %171 = tpu.matmul %170, %1, %cst_47 {dimension_numbers = #tpu.dot_dimension_numbers<[1], [0], [0], [1], [0, 0, 1, 1], [], []>} : vector<2x32xf32>, vector<32x8xf32>, vector<2x8xf32> -> vector<2x8xf32>
    %172 = vector.broadcast %2 : vector<1x8xf32> to vector<2x8xf32>
    %173 = arith.addf %171, %172 : vector<2x8xf32>
    %174 = math.tanh %173 : vector<2x8xf32>
    %175 = math.absf %174 : vector<2x8xf32>
    %176 = vector.shape_cast %175 : vector<2x8xf32> to vector<2x8x1xf32>
    %177 = vector.shape_cast %170 : vector<2x32xf32> to vector<2x1x32xf32>
    %178 = vector.broadcast %176 : vector<2x8x1xf32> to vector<2x8x32xf32>
    %179 = vector.broadcast %177 : vector<2x1x32xf32> to vector<2x8x32xf32>
    %180 = arith.mulf %178, %179 : vector<2x8x32xf32>
    %181 = arith.addf %137, %180 : vector<2x8x32xf32>
    %c4 = arith.constant 4 : index
    %c0_48 = arith.constant 0 : index
    %c0_49 = arith.constant 0 : index
    %182 = vector.load %arg0[%c4, %c0_48, %c0_49] : memref<8x2x128xf32, #tpu.memory_space<vmem>>, vector<1x2x128xf32>
    %183 = vector.shape_cast %182 : vector<1x2x128xf32> to vector<2x128xf32>
    %cst_50 = arith.constant dense<0.000000e+00> : vector<2x128xf32>
    %184 = tpu.matmul %166, %0, %cst_50 {dimension_numbers = #tpu.dot_dimension_numbers<[1], [0], [0], [1], [0, 0, 1, 1], [], []>} : vector<2x32xf32>, vector<32x128xf32>, vector<2x128xf32> -> vector<2x128xf32>
    %185 = arith.addf %183, %184 : vector<2x128xf32>
    %186 = vector.extract_strided_slice %185 {offsets = [0, 0], sizes = [2, 32], strides = [1, 1]} : vector<2x128xf32> to vector<2x32xf32>
    %187 = arith.negf %186 : vector<2x32xf32>
    %188 = math.exp %187 : vector<2x32xf32>
    %cst_51 = arith.constant 1.000000e+00 : f32
    %189 = vector.broadcast %cst_51 : f32 to vector<2x32xf32>
    %190 = arith.addf %189, %188 : vector<2x32xf32>
    %191 = arith.divf %189, %190 : vector<2x32xf32>
    %192 = vector.extract_strided_slice %185 {offsets = [0, 32], sizes = [2, 32], strides = [1, 1]} : vector<2x128xf32> to vector<2x32xf32>
    %193 = arith.negf %192 : vector<2x32xf32>
    %194 = math.exp %193 : vector<2x32xf32>
    %cst_52 = arith.constant 1.000000e+00 : f32
    %195 = vector.broadcast %cst_52 : f32 to vector<2x32xf32>
    %196 = arith.addf %195, %194 : vector<2x32xf32>
    %197 = arith.divf %195, %196 : vector<2x32xf32>
    %198 = vector.extract_strided_slice %185 {offsets = [0, 64], sizes = [2, 32], strides = [1, 1]} : vector<2x128xf32> to vector<2x32xf32>
    %199 = math.tanh %198 : vector<2x32xf32>
    %200 = vector.extract_strided_slice %185 {offsets = [0, 96], sizes = [2, 32], strides = [1, 1]} : vector<2x128xf32> to vector<2x32xf32>
    %201 = arith.negf %200 : vector<2x32xf32>
    %202 = math.exp %201 : vector<2x32xf32>
    %cst_53 = arith.constant 1.000000e+00 : f32
    %203 = vector.broadcast %cst_53 : f32 to vector<2x32xf32>
    %204 = arith.addf %203, %202 : vector<2x32xf32>
    %205 = arith.divf %203, %204 : vector<2x32xf32>
    %206 = arith.mulf %197, %164 : vector<2x32xf32>
    %207 = arith.mulf %191, %199 : vector<2x32xf32>
    %208 = arith.addf %206, %207 : vector<2x32xf32>
    %209 = math.tanh %208 : vector<2x32xf32>
    %210 = arith.mulf %205, %209 : vector<2x32xf32>
    %c4_54 = arith.constant 4 : index
    %c0_55 = arith.constant 0 : index
    %c0_56 = arith.constant 0 : index
    %211 = vector.load %arg1[%c4_54, %c0_55, %c0_56] : memref<8x2x1xf32, #tpu.memory_space<vmem>>, vector<1x2x1xf32>
    %212 = vector.shape_cast %211 : vector<1x2x1xf32> to vector<2x1xf32>
    %213 = vector.broadcast %212 : vector<2x1xf32> to vector<2x32xf32>
    %214 = arith.mulf %210, %213 : vector<2x32xf32>
    %cst_57 = arith.constant dense<0.000000e+00> : vector<2x8xf32>
    %215 = tpu.matmul %214, %1, %cst_57 {dimension_numbers = #tpu.dot_dimension_numbers<[1], [0], [0], [1], [0, 0, 1, 1], [], []>} : vector<2x32xf32>, vector<32x8xf32>, vector<2x8xf32> -> vector<2x8xf32>
    %216 = vector.broadcast %2 : vector<1x8xf32> to vector<2x8xf32>
    %217 = arith.addf %215, %216 : vector<2x8xf32>
    %218 = math.tanh %217 : vector<2x8xf32>
    %219 = math.absf %218 : vector<2x8xf32>
    %220 = vector.shape_cast %219 : vector<2x8xf32> to vector<2x8x1xf32>
    %221 = vector.shape_cast %214 : vector<2x32xf32> to vector<2x1x32xf32>
    %222 = vector.broadcast %220 : vector<2x8x1xf32> to vector<2x8x32xf32>
    %223 = vector.broadcast %221 : vector<2x1x32xf32> to vector<2x8x32xf32>
    %224 = arith.mulf %222, %223 : vector<2x8x32xf32>
    %225 = arith.addf %181, %224 : vector<2x8x32xf32>
    %c5 = arith.constant 5 : index
    %c0_58 = arith.constant 0 : index
    %c0_59 = arith.constant 0 : index
    %226 = vector.load %arg0[%c5, %c0_58, %c0_59] : memref<8x2x128xf32, #tpu.memory_space<vmem>>, vector<1x2x128xf32>
    %227 = vector.shape_cast %226 : vector<1x2x128xf32> to vector<2x128xf32>
    %cst_60 = arith.constant dense<0.000000e+00> : vector<2x128xf32>
    %228 = tpu.matmul %210, %0, %cst_60 {dimension_numbers = #tpu.dot_dimension_numbers<[1], [0], [0], [1], [0, 0, 1, 1], [], []>} : vector<2x32xf32>, vector<32x128xf32>, vector<2x128xf32> -> vector<2x128xf32>
    %229 = arith.addf %227, %228 : vector<2x128xf32>
    %230 = vector.extract_strided_slice %229 {offsets = [0, 0], sizes = [2, 32], strides = [1, 1]} : vector<2x128xf32> to vector<2x32xf32>
    %231 = arith.negf %230 : vector<2x32xf32>
    %232 = math.exp %231 : vector<2x32xf32>
    %cst_61 = arith.constant 1.000000e+00 : f32
    %233 = vector.broadcast %cst_61 : f32 to vector<2x32xf32>
    %234 = arith.addf %233, %232 : vector<2x32xf32>
    %235 = arith.divf %233, %234 : vector<2x32xf32>
    %236 = vector.extract_strided_slice %229 {offsets = [0, 32], sizes = [2, 32], strides = [1, 1]} : vector<2x128xf32> to vector<2x32xf32>
    %237 = arith.negf %236 : vector<2x32xf32>
    %238 = math.exp %237 : vector<2x32xf32>
    %cst_62 = arith.constant 1.000000e+00 : f32
    %239 = vector.broadcast %cst_62 : f32 to vector<2x32xf32>
    %240 = arith.addf %239, %238 : vector<2x32xf32>
    %241 = arith.divf %239, %240 : vector<2x32xf32>
    %242 = vector.extract_strided_slice %229 {offsets = [0, 64], sizes = [2, 32], strides = [1, 1]} : vector<2x128xf32> to vector<2x32xf32>
    %243 = math.tanh %242 : vector<2x32xf32>
    %244 = vector.extract_strided_slice %229 {offsets = [0, 96], sizes = [2, 32], strides = [1, 1]} : vector<2x128xf32> to vector<2x32xf32>
    %245 = arith.negf %244 : vector<2x32xf32>
    %246 = math.exp %245 : vector<2x32xf32>
    %cst_63 = arith.constant 1.000000e+00 : f32
    %247 = vector.broadcast %cst_63 : f32 to vector<2x32xf32>
    %248 = arith.addf %247, %246 : vector<2x32xf32>
    %249 = arith.divf %247, %248 : vector<2x32xf32>
    %250 = arith.mulf %241, %208 : vector<2x32xf32>
    %251 = arith.mulf %235, %243 : vector<2x32xf32>
    %252 = arith.addf %250, %251 : vector<2x32xf32>
    %253 = math.tanh %252 : vector<2x32xf32>
    %254 = arith.mulf %249, %253 : vector<2x32xf32>
    %c5_64 = arith.constant 5 : index
    %c0_65 = arith.constant 0 : index
    %c0_66 = arith.constant 0 : index
    %255 = vector.load %arg1[%c5_64, %c0_65, %c0_66] : memref<8x2x1xf32, #tpu.memory_space<vmem>>, vector<1x2x1xf32>
    %256 = vector.shape_cast %255 : vector<1x2x1xf32> to vector<2x1xf32>
    %257 = vector.broadcast %256 : vector<2x1xf32> to vector<2x32xf32>
    %258 = arith.mulf %254, %257 : vector<2x32xf32>
    %cst_67 = arith.constant dense<0.000000e+00> : vector<2x8xf32>
    %259 = tpu.matmul %258, %1, %cst_67 {dimension_numbers = #tpu.dot_dimension_numbers<[1], [0], [0], [1], [0, 0, 1, 1], [], []>} : vector<2x32xf32>, vector<32x8xf32>, vector<2x8xf32> -> vector<2x8xf32>
    %260 = vector.broadcast %2 : vector<1x8xf32> to vector<2x8xf32>
    %261 = arith.addf %259, %260 : vector<2x8xf32>
    %262 = math.tanh %261 : vector<2x8xf32>
    %263 = math.absf %262 : vector<2x8xf32>
    %264 = vector.shape_cast %263 : vector<2x8xf32> to vector<2x8x1xf32>
    %265 = vector.shape_cast %258 : vector<2x32xf32> to vector<2x1x32xf32>
    %266 = vector.broadcast %264 : vector<2x8x1xf32> to vector<2x8x32xf32>
    %267 = vector.broadcast %265 : vector<2x1x32xf32> to vector<2x8x32xf32>
    %268 = arith.mulf %266, %267 : vector<2x8x32xf32>
    %269 = arith.addf %225, %268 : vector<2x8x32xf32>
    %c6 = arith.constant 6 : index
    %c0_68 = arith.constant 0 : index
    %c0_69 = arith.constant 0 : index
    %270 = vector.load %arg0[%c6, %c0_68, %c0_69] : memref<8x2x128xf32, #tpu.memory_space<vmem>>, vector<1x2x128xf32>
    %271 = vector.shape_cast %270 : vector<1x2x128xf32> to vector<2x128xf32>
    %cst_70 = arith.constant dense<0.000000e+00> : vector<2x128xf32>
    %272 = tpu.matmul %254, %0, %cst_70 {dimension_numbers = #tpu.dot_dimension_numbers<[1], [0], [0], [1], [0, 0, 1, 1], [], []>} : vector<2x32xf32>, vector<32x128xf32>, vector<2x128xf32> -> vector<2x128xf32>
    %273 = arith.addf %271, %272 : vector<2x128xf32>
    %274 = vector.extract_strided_slice %273 {offsets = [0, 0], sizes = [2, 32], strides = [1, 1]} : vector<2x128xf32> to vector<2x32xf32>
    %275 = arith.negf %274 : vector<2x32xf32>
    %276 = math.exp %275 : vector<2x32xf32>
    %cst_71 = arith.constant 1.000000e+00 : f32
    %277 = vector.broadcast %cst_71 : f32 to vector<2x32xf32>
    %278 = arith.addf %277, %276 : vector<2x32xf32>
    %279 = arith.divf %277, %278 : vector<2x32xf32>
    %280 = vector.extract_strided_slice %273 {offsets = [0, 32], sizes = [2, 32], strides = [1, 1]} : vector<2x128xf32> to vector<2x32xf32>
    %281 = arith.negf %280 : vector<2x32xf32>
    %282 = math.exp %281 : vector<2x32xf32>
    %cst_72 = arith.constant 1.000000e+00 : f32
    %283 = vector.broadcast %cst_72 : f32 to vector<2x32xf32>
    %284 = arith.addf %283, %282 : vector<2x32xf32>
    %285 = arith.divf %283, %284 : vector<2x32xf32>
    %286 = vector.extract_strided_slice %273 {offsets = [0, 64], sizes = [2, 32], strides = [1, 1]} : vector<2x128xf32> to vector<2x32xf32>
    %287 = math.tanh %286 : vector<2x32xf32>
    %288 = vector.extract_strided_slice %273 {offsets = [0, 96], sizes = [2, 32], strides = [1, 1]} : vector<2x128xf32> to vector<2x32xf32>
    %289 = arith.negf %288 : vector<2x32xf32>
    %290 = math.exp %289 : vector<2x32xf32>
    %cst_73 = arith.constant 1.000000e+00 : f32
    %291 = vector.broadcast %cst_73 : f32 to vector<2x32xf32>
    %292 = arith.addf %291, %290 : vector<2x32xf32>
    %293 = arith.divf %291, %292 : vector<2x32xf32>
    %294 = arith.mulf %285, %252 : vector<2x32xf32>
    %295 = arith.mulf %279, %287 : vector<2x32xf32>
    %296 = arith.addf %294, %295 : vector<2x32xf32>
    %297 = math.tanh %296 : vector<2x32xf32>
    %298 = arith.mulf %293, %297 : vector<2x32xf32>
    %c6_74 = arith.constant 6 : index
    %c0_75 = arith.constant 0 : index
    %c0_76 = arith.constant 0 : index
    %299 = vector.load %arg1[%c6_74, %c0_75, %c0_76] : memref<8x2x1xf32, #tpu.memory_space<vmem>>, vector<1x2x1xf32>
    %300 = vector.shape_cast %299 : vector<1x2x1xf32> to vector<2x1xf32>
    %301 = vector.broadcast %300 : vector<2x1xf32> to vector<2x32xf32>
    %302 = arith.mulf %298, %301 : vector<2x32xf32>
    %cst_77 = arith.constant dense<0.000000e+00> : vector<2x8xf32>
    %303 = tpu.matmul %302, %1, %cst_77 {dimension_numbers = #tpu.dot_dimension_numbers<[1], [0], [0], [1], [0, 0, 1, 1], [], []>} : vector<2x32xf32>, vector<32x8xf32>, vector<2x8xf32> -> vector<2x8xf32>
    %304 = vector.broadcast %2 : vector<1x8xf32> to vector<2x8xf32>
    %305 = arith.addf %303, %304 : vector<2x8xf32>
    %306 = math.tanh %305 : vector<2x8xf32>
    %307 = math.absf %306 : vector<2x8xf32>
    %308 = vector.shape_cast %307 : vector<2x8xf32> to vector<2x8x1xf32>
    %309 = vector.shape_cast %302 : vector<2x32xf32> to vector<2x1x32xf32>
    %310 = vector.broadcast %308 : vector<2x8x1xf32> to vector<2x8x32xf32>
    %311 = vector.broadcast %309 : vector<2x1x32xf32> to vector<2x8x32xf32>
    %312 = arith.mulf %310, %311 : vector<2x8x32xf32>
    %313 = arith.addf %269, %312 : vector<2x8x32xf32>
    %c7 = arith.constant 7 : index
    %c0_78 = arith.constant 0 : index
    %c0_79 = arith.constant 0 : index
    %314 = vector.load %arg0[%c7, %c0_78, %c0_79] : memref<8x2x128xf32, #tpu.memory_space<vmem>>, vector<1x2x128xf32>
    %315 = vector.shape_cast %314 : vector<1x2x128xf32> to vector<2x128xf32>
    %cst_80 = arith.constant dense<0.000000e+00> : vector<2x128xf32>
    %316 = tpu.matmul %298, %0, %cst_80 {dimension_numbers = #tpu.dot_dimension_numbers<[1], [0], [0], [1], [0, 0, 1, 1], [], []>} : vector<2x32xf32>, vector<32x128xf32>, vector<2x128xf32> -> vector<2x128xf32>
    %317 = arith.addf %315, %316 : vector<2x128xf32>
    %318 = vector.extract_strided_slice %317 {offsets = [0, 0], sizes = [2, 32], strides = [1, 1]} : vector<2x128xf32> to vector<2x32xf32>
    %319 = arith.negf %318 : vector<2x32xf32>
    %320 = math.exp %319 : vector<2x32xf32>
    %cst_81 = arith.constant 1.000000e+00 : f32
    %321 = vector.broadcast %cst_81 : f32 to vector<2x32xf32>
    %322 = arith.addf %321, %320 : vector<2x32xf32>
    %323 = arith.divf %321, %322 : vector<2x32xf32>
    %324 = vector.extract_strided_slice %317 {offsets = [0, 32], sizes = [2, 32], strides = [1, 1]} : vector<2x128xf32> to vector<2x32xf32>
    %325 = arith.negf %324 : vector<2x32xf32>
    %326 = math.exp %325 : vector<2x32xf32>
    %cst_82 = arith.constant 1.000000e+00 : f32
    %327 = vector.broadcast %cst_82 : f32 to vector<2x32xf32>
    %328 = arith.addf %327, %326 : vector<2x32xf32>
    %329 = arith.divf %327, %328 : vector<2x32xf32>
    %330 = vector.extract_strided_slice %317 {offsets = [0, 64], sizes = [2, 32], strides = [1, 1]} : vector<2x128xf32> to vector<2x32xf32>
    %331 = math.tanh %330 : vector<2x32xf32>
    %332 = vector.extract_strided_slice %317 {offsets = [0, 96], sizes = [2, 32], strides = [1, 1]} : vector<2x128xf32> to vector<2x32xf32>
    %333 = arith.negf %332 : vector<2x32xf32>
    %334 = math.exp %333 : vector<2x32xf32>
    %cst_83 = arith.constant 1.000000e+00 : f32
    %335 = vector.broadcast %cst_83 : f32 to vector<2x32xf32>
    %336 = arith.addf %335, %334 : vector<2x32xf32>
    %337 = arith.divf %335, %336 : vector<2x32xf32>
    %338 = arith.mulf %329, %296 : vector<2x32xf32>
    %339 = arith.mulf %323, %331 : vector<2x32xf32>
    %340 = arith.addf %338, %339 : vector<2x32xf32>
    %341 = math.tanh %340 : vector<2x32xf32>
    %342 = arith.mulf %337, %341 : vector<2x32xf32>
    %c7_84 = arith.constant 7 : index
    %c0_85 = arith.constant 0 : index
    %c0_86 = arith.constant 0 : index
    %343 = vector.load %arg1[%c7_84, %c0_85, %c0_86] : memref<8x2x1xf32, #tpu.memory_space<vmem>>, vector<1x2x1xf32>
    %344 = vector.shape_cast %343 : vector<1x2x1xf32> to vector<2x1xf32>
    %345 = vector.broadcast %344 : vector<2x1xf32> to vector<2x32xf32>
    %346 = arith.mulf %342, %345 : vector<2x32xf32>
    %cst_87 = arith.constant dense<0.000000e+00> : vector<2x8xf32>
    %347 = tpu.matmul %346, %1, %cst_87 {dimension_numbers = #tpu.dot_dimension_numbers<[1], [0], [0], [1], [0, 0, 1, 1], [], []>} : vector<2x32xf32>, vector<32x8xf32>, vector<2x8xf32> -> vector<2x8xf32>
    %348 = vector.broadcast %2 : vector<1x8xf32> to vector<2x8xf32>
    %349 = arith.addf %347, %348 : vector<2x8xf32>
    %350 = math.tanh %349 : vector<2x8xf32>
    %351 = math.absf %350 : vector<2x8xf32>
    %352 = vector.shape_cast %351 : vector<2x8xf32> to vector<2x8x1xf32>
    %353 = vector.shape_cast %346 : vector<2x32xf32> to vector<2x1x32xf32>
    %354 = vector.broadcast %352 : vector<2x8x1xf32> to vector<2x8x32xf32>
    %355 = vector.broadcast %353 : vector<2x1x32xf32> to vector<2x8x32xf32>
    %356 = arith.mulf %354, %355 : vector<2x8x32xf32>
    %357 = arith.addf %313, %356 : vector<2x8x32xf32>
    %358 = vector.shape_cast %357 : vector<2x8x32xf32> to vector<16x32xf32>
    %c0_88 = arith.constant 0 : index
    %c0_89 = arith.constant 0 : index
    %359 = vector.load %arg5[%c0_88, %c0_89] : memref<32x16xf32, #tpu.memory_space<vmem>>, vector<32x16xf32>
    %cst_90 = arith.constant dense<0.000000e+00> : vector<16x16xf32>
    %360 = tpu.matmul %358, %359, %cst_90 {dimension_numbers = #tpu.dot_dimension_numbers<[1], [0], [0], [1], [0, 0, 1, 1], [], []>} : vector<16x32xf32>, vector<32x16xf32>, vector<16x16xf32> -> vector<16x16xf32>
    %c0_91 = arith.constant 0 : index
    %c0_92 = arith.constant 0 : index
    %361 = vector.load %arg6[%c0_91, %c0_92] : memref<1x16xf32, #tpu.memory_space<vmem>>, vector<1x16xf32>
    %362 = vector.broadcast %361 : vector<1x16xf32> to vector<16x16xf32>
    %363 = arith.addf %360, %362 : vector<16x16xf32>
    %364 = arith.negf %363 : vector<16x16xf32>
    %365 = math.exp %364 : vector<16x16xf32>
    %cst_93 = arith.constant 1.000000e+00 : f32
    %366 = vector.broadcast %cst_93 : f32 to vector<16x16xf32>
    %367 = arith.addf %366, %365 : vector<16x16xf32>
    %368 = arith.divf %366, %367 : vector<16x16xf32>
    %369 = vector.shape_cast %368 : vector<16x16xf32> to vector<2x8x16xf32>
    %c0_94 = arith.constant 0 : index
    %c0_95 = arith.constant 0 : index
    %370 = vector.load %arg7[%c0_94, %c0_95] : memref<1x16xf32, #tpu.memory_space<vmem>>, vector<1x16xf32>
    %371 = vector.shape_cast %370 : vector<1x16xf32> to vector<1x1x16xf32>
    %372 = vector.broadcast %371 : vector<1x1x16xf32> to vector<2x8x16xf32>
    %373 = arith.mulf %369, %372 : vector<2x8x16xf32>
    %cst_96 = arith.constant dense<0.000000e+00> : vector<2x8xf32>
    %374 = vector.multi_reduction <add>, %373, %cst_96 [2] : vector<2x8x16xf32> to vector<2x8xf32>
    %c0_97 = arith.constant 0 : index
    %c0_98 = arith.constant 0 : index
    %375 = vector.load %arg8[%c0_97, %c0_98] : memref<1x1xf32, #tpu.memory_space<vmem>>, vector<1x1xf32>
    %376 = vector.broadcast %375 : vector<1x1xf32> to vector<2x8xf32>
    %377 = arith.addf %374, %376 : vector<2x8xf32>
    %cst_99 = arith.constant dense<0xFF800000> : vector<2xf32>
    %378 = vector.multi_reduction <maximumf>, %377, %cst_99 [1] : vector<2x8xf32> to vector<2xf32>
    %379 = vector.shape_cast %378 : vector<2xf32> to vector<2x1xf32>
    %380 = vector.broadcast %379 : vector<2x1xf32> to vector<2x8xf32>
    %381 = arith.subf %377, %380 : vector<2x8xf32>
    %382 = math.exp %381 : vector<2x8xf32>
    %cst_100 = arith.constant dense<0.000000e+00> : vector<2xf32>
    %383 = vector.multi_reduction <add>, %382, %cst_100 [1] : vector<2x8xf32> to vector<2xf32>
    %384 = vector.shape_cast %383 : vector<2xf32> to vector<2x1xf32>
    %385 = math.log %384 : vector<2x1xf32>
    %386 = arith.addf %385, %379 : vector<2x1xf32>
    %387 = vector.broadcast %386 : vector<2x1xf32> to vector<2x8xf32>
    %388 = arith.subf %377, %387 : vector<2x8xf32>
    %c0_101 = arith.constant 0 : index
    %c0_102 = arith.constant 0 : index
    %389 = vector.load %arg12[%c0_101, %c0_102] : memref<2x8xf32, #tpu.memory_space<vmem>>, vector<2x8xf32>
    tpu.vector_store %arg12[%c0_101, %c0_102], %388 {strides = array<i32>} : memref<2x8xf32, #tpu.memory_space<vmem>>, vector<2x8xf32>,
    %390 = tpu.iota {dimensions = array<i32: 1>} : vector<2x8xi32>
    %391 = vector.broadcast %379 : vector<2x1xf32> to vector<2x8xf32>
    %392 = arith.cmpf oeq, %377, %391 : vector<2x8xf32>
    %c8_i32 = arith.constant 8 : i32
    %393 = vector.broadcast %c8_i32 : i32 to vector<2x8xi32>
    %394 = arith.select %392, %390, %393 : vector<2x8xi1>, vector<2x8xi32>
    %cst_103 = arith.constant dense<2147483647> : vector<2xi32>
    %395 = vector.multi_reduction <minsi>, %394, %cst_103 [1] : vector<2x8xi32> to vector<2xi32>
    %396 = vector.shape_cast %395 : vector<2xi32> to vector<2x1xi32>
    %397 = vector.broadcast %396 : vector<2x1xi32> to vector<2x8xi32>
    %398 = arith.cmpi eq, %390, %397 : vector<2x8xi32>
    %399 = arith.extui %398 : vector<2x8xi1> to vector<2x8xi32>
    %400 = arith.sitofp %399 : vector<2x8xi32> to vector<2x8xf32>
    %401 = vector.shape_cast %400 : vector<2x8xf32> to vector<2x8x1xf32>
    %402 = vector.broadcast %401 : vector<2x8x1xf32> to vector<2x8x16xf32>
    %403 = arith.mulf %402, %369 : vector<2x8x16xf32>
    %cst_104 = arith.constant dense<0.000000e+00> : vector<2x16xf32>
    %404 = vector.multi_reduction <add>, %403, %cst_104 [1] : vector<2x8x16xf32> to vector<2x16xf32>
    %c0_105 = arith.constant 0 : index
    %c0_106 = arith.constant 0 : index
    %405 = vector.load %arg9[%c0_105, %c0_106] : memref<1x16xf32, #tpu.memory_space<vmem>>, vector<1x16xf32>
    %406 = vector.broadcast %405 : vector<1x16xf32> to vector<2x16xf32>
    %407 = arith.mulf %404, %406 : vector<2x16xf32>
    %cst_107 = arith.constant dense<0.000000e+00> : vector<2xf32>
    %408 = vector.multi_reduction <add>, %407, %cst_107 [1] : vector<2x16xf32> to vector<2xf32>
    %409 = vector.shape_cast %408 : vector<2xf32> to vector<2x1xf32>
    %c0_108 = arith.constant 0 : index
    %c0_109 = arith.constant 0 : index
    %410 = vector.load %arg10[%c0_108, %c0_109] : memref<1x1xf32, #tpu.memory_space<vmem>>, vector<1x1xf32>
    %411 = vector.broadcast %410 : vector<1x1xf32> to vector<2x1xf32>
    %412 = arith.addf %409, %411 : vector<2x1xf32>
    %c0_110 = arith.constant 0 : index
    %c0_111 = arith.constant 0 : index
    %413 = vector.load %arg11[%c0_110, %c0_111] : memref<2x1xf32, #tpu.memory_space<vmem>>, vector<2x1xf32>
    tpu.vector_store %arg11[%c0_110, %c0_111], %412 {strides = array<i32>} : memref<2x1xf32, #tpu.memory_space<vmem>>, vector<2x1xf32>,
    return
  }
}

</mosaic_0001>

<bundles_post_ra>
// kernel: tpu_custom_call.1
= control target key start
LH: loop header
LB: loop body
LE: loop exit
PB: predicated region body
PF: predicated region fallthrough
CT: control target
= control target key end

     0   :  { %s3398_s0 = inlined_call_operand.vmem [shape: f32[8,2,128], index: 0, kind: input, shape index: {}]   ;;  %s3399_s1 = inlined_call_operand.vmem [shape: f32[8,2,1], index: 1, kind: input, shape index: {}]   ;;  %s3400_s2 = inlined_call_operand.vmem [shape: f32[32,128], index: 2, kind: input, shape index: {}]   ;;  %s3401_s3 = inlined_call_operand.vmem [shape: f32[32,8], index: 3, kind: input, shape index: {}]   ;;  %s3402_s4 = inlined_call_operand.vmem [shape: f32[1,8], index: 4, kind: input, shape index: {}]   ;;  %s3403_s5 = inlined_call_operand.vmem [shape: f32[32,16], index: 5, kind: input, shape index: {}]   ;;  %s3404_s6 = inlined_call_operand.vmem [shape: f32[1,16], index: 6, kind: input, shape index: {}]   ;;  %s3405_s7 = inlined_call_operand.vmem [shape: f32[1,16], index: 7, kind: input, shape index: {}]   ;;  %s3406_s8 = inlined_call_operand.<no memory space> [shape: f32[1,1], index: 8, kind: input, shape index: {}]   ;;  %s3407_s9 = inlined_call_operand.vmem [shape: f32[1,16], index: 9, kind: input, shape index: {}]   ;;  %s3408_s11 = inlined_call_operand.vmem [shape: f32[2,1], index: 11, kind: output, shape index: {0}]   ;;  %s3409_s12 = inlined_call_operand.hbm [shape: f32[2,8], index: 12, kind: output, shape index: {1}]   ;;  %s3410_s10 = inlined_call_operand.<no memory space> [shape: f32[1,1], index: 10, kind: input, shape index: {}]  }
   0x1   :  { %v18_v0 = vstv %s3406_s8  ;;  %v20_v1 = vstv %s3410_s10 }
   0x2   :  { %19 = vst [vmem:[#allocation2] sm:$0x1] %v18_v0  ;;  %21 = vst [vmem:[#allocation3] sm:$0x1] %v20_v1 }
   0x3   :  { %v45_v2 = vld [vmem:[%s3400_s2] sm:$0xff]  ;;  %v46_v3 = vld [vmem:[%s3400_s2 + $0x8] sm:$0xff]  ;;  %v47_v4 = vld [vmem:[%s3400_s2 + $0x10] sm:$0xff]  ;;  %v2850_v5 = vmov 0.0|0.0   ;;  %vm2851_vm0 = vmmov 0   ;;  %v2852_v8 = vmov 0.0  }
   0x4   :  { %2618 = vmatprep.subr.bf16.mxu0 %v2850_v5  ;;  %v2939_v6 = vpack.c.bf16 %v46_v3, %v45_v2  ;;  %v48_v7 = vld [vmem:[%s3400_s2 + $0x18] sm:$0xff]  ;;  %2439 = vmatprep.mubr.msk.f32.mxu0 %vm2851_vm0, %v2852_v8 }
   0x5   :  { %22 = vsyncpa [#allocation5], 0  ;;  %2624 = vmatprep.subr.bf16.mxu1 %v2850_v5  ;;  %2450 = vmatprep.mubr.msk.f32.mxu1 %vm2851_vm0, %v2852_v8  ;;  %v2950_v9 = vpack.c.bf16 %v48_v7, %v47_v4  ;;  %v54_v10 = vld [vmem:[%s3398_s0] sm:$0x3]  ;;  %s2853_s14 = smov 64   ;;  %s2854_s15 = smov 32  }
   0x6   :  { %2620 = vmatpush3.bf16.msra.mxu0 %v2939_v6  ;;  %vm55_vm1 = vcmask 261120   ;;  %v2300_v28 = vld [vmem:[%s3398_s0 + $0x2] sm:$0x3]  ;;  %v2305_v46 = vld [vmem:[%s3398_s0 + $0x4] sm:$0x3]  ;;  %vm2070_vm2 = vcmask 130048  }
   0x7   :  { %2621 = vmatprep.subr.bf16.mxu0 %v2850_v5  ;;  %v2310_v0 = vld [vmem:[%s3398_s0 + $0x6] sm:$0x3]  ;;  %vm2101_vm3 = vcmask 1041409   ;;  %vm2104_vm4 = vcmask 58368   ;;  %vm2265_vm9 = vcmask 123904   ;;  %vm2277_vm10 = vcmask 1024  }
   0x8   :  { %s2857_s23 = smov [#allocation4]  }
   0x9   :  { %s2287_s24 = sshll.u32 %s2857_s23, 4  ;;  %s2288_s24 = int_to_ptr.vmem [resolvable:$true] %s2287_s24 }
   0xa   :  { %2623 = vmatpush3.bf16.msra.mxu0 %v2950_v9  ;;  %s2826_s25 = scalar_lea.vmem %s2288_s24, 32  ;;  %p2831_p1 = scmp.lt.s32.totalorder %s2288_s24, %s2288_s24 }
   0xb   :  { %2630 = vmatprep.subr.bf16.mxu0 %v2850_v5  ;;  %p2827_p0 = scmp.ne.s32.totalorder %s2288_s24, %s2826_s25  ;;  %p2832_p2 = scmp.lt.s32.totalorder %s2826_s25, %s2826_s25 }
   0xd   :  { %2440 = vmatmul.mubr.f32.vlgmr.msra.gmra.mrb[0].mxu0 %v2852_v8  ;;  %p2833_p3 = por %p2832_p2, %p2831_p1 }
   0xe   :  { %2632 = vmatpush3.bf16.msra.mxu0 %v2939_v6  ;;  %2461 = vmatprep.mubr.msk.f32.mxu0 %vm2851_vm0, %v2852_v8 }
   0xf   :  { %2633 = vmatprep.subr.bf16.mxu0 %v2850_v5  ;;  %p2834_p4 = pnand %p2833_p3, %p2827_p0 }
  0x12   :  { %2635 = vmatpush3.bf16.msra.mxu0 %v2950_v9 }
  0x13   :  { %2642 = vmatprep.subr.bf16.mxu0 %v2850_v5 }
  0xe0   :  { %v125_v11 = vpop.f32.mrb[0].mxu0 }
  0xe1   :  { %v129_v12 = vadd.f32 %v125_v11, %v54_v10  ;;  %v2441_v13 = vpop.f32.mrb[1].mxu0 }
  0xe3   :  { %2732 = vtanh.f32 %v129_v12  ;;  %v2297_v15 = vmul.f32 -1.442695, %v129_v12 }
  0xe5   :  { %2734 = vpow2.f32 %v2297_v15 }
  0xed   :  { %v2733_v14 = vpop.eup %2732 }
  0xee   :  { %139 = vrot.lane.b32.xlu0 %v2733_v14, %s2853_s14 }
  0xef   :  { %v2735_v16 = vpop.eup %2734 }
  0xf0   :  { %v133_v17 = vadd.f32 1.0, %v2735_v16 }
  0xf2   :  { %2736 = vrcp.f32 %v133_v17 }
  0xfc   :  { %v2737_v18 = vpop.eup %2736 }
  0xfd   :  { %v137_v21 = vmul.f32 0.0, %v2737_v18 }
 0x160   :  { %v140_v19 = vpop.permute.xlu0 %139 }
 0x161   :  { %v142_v20 = vmul.f32 %v2737_v18, %v140_v19 }
 0x163   :  { %144 = vrot.lane.b32.xlu0 %v142_v20, %s2854_s15 }
 0x1d5   :  { %v145_v22 = vpop.permute.xlu0 %144 }
 0x1d6   :  { %v147_v23 = vadd.f32 %v145_v22, %v137_v21  ;;  %v2315_v22 = vld [vmem:[%s3398_s0 + $0x8] sm:$0x3] }
 0x1d8   :  { %2738 = vtanh.f32 %v147_v23 }
 0x1e2   :  { %v2739_v24 = vpop.eup %2738 }
 0x1e3   :  { %150 = vrot.lane.b32.xlu1 %v2739_v24, %s2853_s14 }
 0x255   :  { %v151_v25 = vpop.permute.xlu1 %150 }
 0x256   :  { %v2968_v26 = vmul.f32 %v2737_v18, %v151_v25 }
 0x258   :  { %297 = vrot.lane.b32.xlu1 %v2968_v26, %s2854_s15 }
 0x2ca   :  { %v298_v27 = vpop.permute.xlu1 %297 }
 0x2cb   :  { %2462 = vmatmul.mubr.msk.f32.vlgmr.msra.gmra.mrb[2].mxu0 %vm55_vm1, %v298_v27 }
 0x2cc   :  { %2644 = vmatpush3.bf16.msra.mxu0 %v2939_v6  ;;  %2483 = vmatprep.mubr.msk.f32.mxu0 %vm2851_vm0, %v2852_v8 }
 0x2cd   :  { %2645 = vmatprep.subr.bf16.mxu0 %v2850_v5 }
 0x2d0   :  { %2647 = vmatpush3.bf16.msra.mxu0 %v2950_v9 }
 0x2d1   :  { %2654 = vmatprep.subr.bf16.mxu0 %v2850_v5 }
 0x39e   :  { %v367_v29 = vpop.f32.mrb[2].mxu0 }
 0x39f   :  { %v371_v30 = vadd.f32 %v2300_v28, %v367_v29  ;;  %v2463_v31 = vpop.f32.mrb[3].mxu0 }
 0x3a1   :  { %2740 = vtanh.f32 %v371_v30  ;;  %v2302_v33 = vmul.f32 -1.442695, %v371_v30 }
 0x3a3   :  { %2742 = vpow2.f32 %v2302_v33 }
 0x3ab   :  { %v2741_v32 = vpop.eup %2740 }
 0x3ac   :  { %381 = vrot.lane.b32.xlu0 %v2741_v32, %s2853_s14 }
 0x3ad   :  { %v2743_v34 = vpop.eup %2742 }
 0x3ae   :  { %v375_v35 = vadd.f32 1.0, %v2743_v34 }
 0x3b0   :  { %2744 = vrcp.f32 %v375_v35 }
 0x3ba   :  { %v2745_v36 = vpop.eup %2744 }
 0x3bb   :  { %v379_v39 = vmul.f32 %v2745_v36, %v147_v23 }
 0x41e   :  { %v382_v37 = vpop.permute.xlu0 %381 }
 0x41f   :  { %v384_v38 = vmul.f32 %v2745_v36, %v382_v37 }
 0x421   :  { %386 = vrot.lane.b32.xlu1 %v384_v38, %s2854_s15 }
 0x493   :  { %v387_v40 = vpop.permute.xlu1 %386 }
 0x494   :  { %v389_v41 = vadd.f32 %v387_v40, %v379_v39 }
 0x496   :  { %2746 = vtanh.f32 %v389_v41 }
 0x4a0   :  { %v2747_v42 = vpop.eup %2746 }
 0x4a1   :  { %392 = vrot.lane.b32.xlu0 %v2747_v42, %s2853_s14 }
 0x513   :  { %v393_v43 = vpop.permute.xlu0 %392 }
 0x514   :  { %v2985_v44 = vmul.f32 %v2745_v36, %v393_v43 }
 0x516   :  { %534 = vrot.lane.b32.xlu1 %v2985_v44, %s2854_s15 }
 0x588   :  { %v535_v45 = vpop.permute.xlu1 %534 }
 0x589   :  { %2484 = vmatmul.mubr.msk.f32.vlgmr.msra.gmra.mrb[4].mxu0 %vm55_vm1, %v535_v45 }
 0x58a   :  { %2656 = vmatpush3.bf16.msra.mxu0 %v2939_v6  ;;  %2505 = vmatprep.mubr.msk.f32.mxu0 %vm2851_vm0, %v2852_v8 }
 0x58b   :  { %2657 = vmatprep.subr.bf16.mxu0 %v2850_v5 }
 0x58e   :  { %2659 = vmatpush3.bf16.msra.mxu0 %v2950_v9 }
 0x58f   :  { %2666 = vmatprep.subr.bf16.mxu0 %v2850_v5 }
 0x65c   :  { %v604_v47 = vpop.f32.mrb[4].mxu0 }
 0x65d   :  { %v608_v48 = vadd.f32 %v2305_v46, %v604_v47  ;;  %v2485_v49 = vpop.f32.mrb[5].mxu0 }
 0x65f   :  { %2748 = vtanh.f32 %v608_v48  ;;  %v2307_v51 = vmul.f32 -1.442695, %v608_v48 }
 0x661   :  { %2750 = vpow2.f32 %v2307_v51 }
 0x669   :  { %v2749_v50 = vpop.eup %2748 }
 0x66a   :  { %618 = vrot.lane.b32.xlu0 %v2749_v50, %s2853_s14 }
 0x66b   :  { %v2751_v52 = vpop.eup %2750 }
 0x66c   :  { %v612_v53 = vadd.f32 1.0, %v2751_v52 }
 0x66e   :  { %2752 = vrcp.f32 %v612_v53 }
 0x678   :  { %v2753_v54 = vpop.eup %2752 }
 0x679   :  { %v616_v57 = vmul.f32 %v2753_v54, %v389_v41  ;;  %v2320_v41 = vld [vmem:[%s3398_s0 + $0xa] sm:$0x3] }
 0x6dc   :  { %v619_v55 = vpop.permute.xlu0 %618 }
 0x6dd   :  { %v621_v56 = vmul.f32 %v2753_v54, %v619_v55 }
 0x6df   :  { %623 = vrot.lane.b32.xlu1 %v621_v56, %s2854_s15 }
 0x751   :  { %v624_v58 = vpop.permute.xlu1 %623 }
 0x752   :  { %v626_v59 = vadd.f32 %v624_v58, %v616_v57 }
 0x754   :  { %2754 = vtanh.f32 %v626_v59 }
 0x75e   :  { %v2755_v60 = vpop.eup %2754 }
 0x75f   :  { %629 = vrot.lane.b32.xlu0 %v2755_v60, %s2853_s14  ;;  %v2325_v60 = vld [vmem:[%s3398_s0 + $0xc] sm:$0x3] }
 0x7d1   :  { %v630_v61 = vpop.permute.xlu0 %629 }
 0x7d2   :  { %v3002_v62 = vmul.f32 %v2753_v54, %v630_v61 }
 0x7d4   :  { %771 = vrot.lane.b32.xlu1 %v3002_v62, %s2854_s15 }
 0x846   :  { %v772_v63 = vpop.permute.xlu1 %771 }
 0x847   :  { %2506 = vmatmul.mubr.msk.f32.vlgmr.msra.gmra.mrb[6].mxu0 %vm55_vm1, %v772_v63 }
 0x848   :  { %2668 = vmatpush3.bf16.msra.mxu0 %v2939_v6  ;;  %2527 = vmatprep.mubr.msk.f32.mxu0 %vm2851_vm0, %v2852_v8 }
 0x849   :  { %2669 = vmatprep.subr.bf16.mxu0 %v2850_v5 }
 0x84c   :  { %2671 = vmatpush3.bf16.msra.mxu0 %v2950_v9 }
 0x84d   :  { %2678 = vmatprep.subr.bf16.mxu0 %v2850_v5 }
 0x91a   :  { %v841_v1 = vpop.f32.mrb[6].mxu0 }
 0x91b   :  { %v845_v2 = vadd.f32 %v2310_v0, %v841_v1  ;;  %v2507_v3 = vpop.f32.mrb[7].mxu0 }
 0x91d   :  { %2756 = vtanh.f32 %v845_v2  ;;  %v2312_v7 = vmul.f32 -1.442695, %v845_v2 }
 0x91f   :  { %2758 = vpow2.f32 %v2312_v7 }
 0x927   :  { %v2757_v4 = vpop.eup %2756 }
 0x928   :  { %855 = vrot.lane.b32.xlu0 %v2757_v4, %s2853_s14 }
 0x929   :  { %v2759_v10 = vpop.eup %2758 }
 0x92a   :  { %v849_v11 = vadd.f32 1.0, %v2759_v10 }
 0x92c   :  { %2760 = vrcp.f32 %v849_v11 }
 0x936   :  { %v2761_v12 = vpop.eup %2760 }
 0x937   :  { %v853_v15 = vmul.f32 %v2761_v12, %v626_v59 }
 0x99a   :  { %v856_v13 = vpop.permute.xlu0 %855 }
 0x99b   :  { %v858_v14 = vmul.f32 %v2761_v12, %v856_v13 }
 0x99d   :  { %860 = vrot.lane.b32.xlu1 %v858_v14, %s2854_s15 }
 0xa0f   :  { %v861_v16 = vpop.permute.xlu1 %860 }
 0xa10   :  { %v863_v17 = vadd.f32 %v861_v16, %v853_v15 }
 0xa12   :  { %2762 = vtanh.f32 %v863_v17 }
 0xa1c   :  { %v2763_v18 = vpop.eup %2762 }
 0xa1d   :  { %866 = vrot.lane.b32.xlu0 %v2763_v18, %s2853_s14  ;;  %v2330_v18 = vld [vmem:[%s3398_s0 + $0xe] sm:$0x3] }
 0xa8f   :  { %v867_v19 = vpop.permute.xlu0 %866 }
 0xa90   :  { %v3019_v20 = vmul.f32 %v2761_v12, %v867_v19 }
 0xa92   :  { %1008 = vrot.lane.b32.xlu1 %v3019_v20, %s2854_s15 }
 0xb04   :  { %v1009_v21 = vpop.permute.xlu1 %1008 }
 0xb05   :  { %2528 = vmatmul.mubr.msk.f32.vlgmr.msra.gmra.mrb[8].mxu0 %vm55_vm1, %v1009_v21 }
 0xb06   :  { %2680 = vmatpush3.bf16.msra.mxu0 %v2939_v6  ;;  %2549 = vmatprep.mubr.msk.f32.mxu0 %vm2851_vm0, %v2852_v8 }
 0xb07   :  { %2681 = vmatprep.subr.bf16.mxu0 %v2850_v5 }
 0xb0a   :  { %2683 = vmatpush3.bf16.msra.mxu0 %v2950_v9 }
 0xb0b   :  { %2690 = vmatprep.subr.bf16.mxu0 %v2850_v5 }
 0xbd8   :  { %v1078_v23 = vpop.f32.mrb[8].mxu0 }
 0xbd9   :  { %v1082_v24 = vadd.f32 %v2315_v22, %v1078_v23  ;;  %v2529_v25 = vpop.f32.mrb[9].mxu0 }
 0xbda   :  { %v2313_v25 = vld [vmem:[%s3399_s1 + $0x6] sm:$0x3] }
 0xbdb   :  { %2764 = vtanh.f32 %v1082_v24  ;;  %v2317_v28 = vmul.f32 -1.442695, %v1082_v24  ;;  %v154_v24 = vld [vmem:[%s3399_s1] sm:$0x3] }
 0xbdd   :  { %2766 = vpow2.f32 %v2317_v28  ;;  %v2333_v28 = vld [vmem:[%s3399_s1 + $0xe] sm:$0x3] }
 0xbe5   :  { %v2765_v27 = vpop.eup %2764 }
 0xbe6   :  { %1092 = vrot.lane.b32.xlu0 %v2765_v27, %s2853_s14  ;;  %v2323_v27 = vld [vmem:[%s3399_s1 + $0xa] sm:$0x3] }
 0xbe7   :  { %v2767_v29 = vpop.eup %2766 }
 0xbe8   :  { %v1086_v30 = vadd.f32 1.0, %v2767_v29 }
 0xbea   :  { %2768 = vrcp.f32 %v1086_v30 }
 0xbf4   :  { %v2769_v31 = vpop.eup %2768 }
 0xbf5   :  { %v1090_v34 = vmul.f32 %v2769_v31, %v863_v17  ;;  %v2855_v17 = vmov 0  }
 0xbf6   :  { %2730 = vset.pattern.permute.xlu0 %v2855_v17  ;;  %2731 = vset.pattern.permute.xlu1 %v2855_v17 }
 0xc58   :  { %v1093_v32 = vpop.permute.xlu0 %1092 }
 0xc59   :  { %v1095_v33 = vmul.f32 %v2769_v31, %v1093_v32  ;;  %v49_v32 = vld [vmem:[%s3401_s3] sm:$0xff] }
 0xc5b   :  { %1097 = vrot.lane.b32.xlu1 %v1095_v33, %s2854_s15  ;;  %v50_v33 = vld [vmem:[%s3401_s3 + $0x8] sm:$0xff] }
 0xccd   :  { %v1098_v35 = vpop.permute.xlu1 %1097 }
 0xcce   :  { %v1100_v36 = vadd.f32 %v1098_v35, %v1090_v34  ;;  %v3096_v34 = vpack.c.bf16 %v50_v33, %v49_v32 }
 0xcd0   :  { %2770 = vtanh.f32 %v1100_v36  ;;  %2626 = vmatpush3.bf16.msra.mxu1 %v3096_v34 }
 0xcd1   :  { %2627 = vmatprep.subr.bf16.mxu1 %v2850_v5 }
 0xcda   :  { %v2771_v37 = vpop.eup %2770 }
 0xcdb   :  { %1103 = vrot.lane.b32.xlu0 %v2771_v37, %s2853_s14 }
 0xd4d   :  { %v1104_v38 = vpop.permute.xlu0 %1103 }
 0xd4e   :  { %v3036_v39 = vmul.f32 %v2769_v31, %v1104_v38  ;;  %v51_v38 = vld [vmem:[%s3401_s3 + $0x10] sm:$0xff] }
 0xd50   :  { %1245 = vrot.lane.b32.xlu1 %v3036_v39, %s2854_s15 }
 0xdc2   :  { %v1246_v40 = vpop.permute.xlu1 %1245 }
 0xdc3   :  { %2550 = vmatmul.mubr.msk.f32.vlgmr.msra.gmra.mrb[10].mxu0 %vm55_vm1, %v1246_v40  ;;  %v52_v40 = vld [vmem:[%s3401_s3 + $0x18] sm:$0xff] }
 0xdc4   :  { %2692 = vmatpush3.bf16.msra.mxu0 %v2939_v6  ;;  %2571 = vmatprep.mubr.msk.f32.mxu0 %vm2851_vm0, %v2852_v8 }
 0xdc5   :  { %2693 = vmatprep.subr.bf16.mxu0 %v2850_v5 }
 0xdc8   :  { %2695 = vmatpush3.bf16.msra.mxu0 %v2950_v9 }
 0xdc9   :  { %2702 = vmatprep.subr.bf16.mxu0 %v2850_v5 }
 0xe96   :  { %v1315_v42 = vpop.f32.mrb[10].mxu0 }
 0xe97   :  { %v1319_v43 = vadd.f32 %v2320_v41, %v1315_v42  ;;  %v2551_v45 = vpop.f32.mrb[11].mxu0  ;;  %v3106_v41 = vpack.c.bf16 %v52_v40, %v51_v38  ;;  %v2303_v42 = vld [vmem:[%s3399_s1 + $0x2] sm:$0x3] }
 0xe98   :  { %v2318_v45 = vld [vmem:[%s3399_s1 + $0x8] sm:$0x3] }
 0xe99   :  { %2772 = vtanh.f32 %v1319_v43  ;;  %v2322_v47 = vmul.f32 -1.442695, %v1319_v43  ;;  %2629 = vmatpush3.bf16.msra.mxu1 %v3106_v41  ;;  %v2308_v43 = vld [vmem:[%s3399_s1 + $0x4] sm:$0x3] }
 0xe9a   :  { %2636 = vmatprep.subr.bf16.mxu1 %v2850_v5 }
 0xe9b   :  { %2774 = vpow2.f32 %v2322_v47 }
 0xea3   :  { %v2773_v46 = vpop.eup %2772 }
 0xea4   :  { %1329 = vrot.lane.b32.xlu0 %v2773_v46, %s2853_s14  ;;  %v2328_v46 = vld [vmem:[%s3399_s1 + $0xc] sm:$0x3] }
 0xea5   :  { %v2775_v48 = vpop.eup %2774 }
 0xea6   :  { %v1323_v49 = vadd.f32 1.0, %v2775_v48 }
 0xea8   :  { %2776 = vrcp.f32 %v1323_v49 }
 0xeb2   :  { %v2777_v50 = vpop.eup %2776 }
 0xeb3   :  { %v1327_v53 = vmul.f32 %v2777_v50, %v1100_v36 }
 0xf16   :  { %v1330_v51 = vpop.permute.xlu0 %1329 }
 0xf17   :  { %v1332_v52 = vmul.f32 %v2777_v50, %v1330_v51 }
 0xf19   :  { %1334 = vrot.lane.b32.xlu1 %v1332_v52, %s2854_s15 }
 0xf8b   :  { %v1335_v54 = vpop.permute.xlu1 %1334 }
 0xf8c   :  { %v1337_v55 = vadd.f32 %v1335_v54, %v1327_v53 }
 0xf8e   :  { %2778 = vtanh.f32 %v1337_v55 }
 0xf98   :  { %v2779_v56 = vpop.eup %2778 }
 0xf99   :  { %1340 = vrot.lane.b32.xlu0 %v2779_v56, %s2853_s14 }
0x100b   :  { %v1341_v57 = vpop.permute.xlu0 %1340 }
0x100c   :  { %v3053_v58 = vmul.f32 %v2777_v50, %v1341_v57 }
0x100e   :  { %1482 = vrot.lane.b32.xlu1 %v3053_v58, %s2854_s15 }
0x1080   :  { %v1483_v59 = vpop.permute.xlu1 %1482 }
0x1081   :  { %2572 = vmatmul.mubr.msk.f32.vlgmr.msra.gmra.mrb[12].mxu0 %vm55_vm1, %v1483_v59 }
0x1082   :  { %2704 = vmatpush3.bf16.msra.mxu0 %v2939_v6  ;;  %2593 = vmatprep.mubr.msk.f32.mxu0 %vm2851_vm0, %v2852_v8 }
0x1083   :  { %2705 = vmatprep.subr.bf16.mxu0 %v2850_v5 }
0x1086   :  { %2707 = vmatpush3.bf16.msra.mxu0 %v2950_v9 }
0x1154   :  { %v1552_v61 = vpop.f32.mrb[12].mxu0 }
0x1155   :  { %v1556_v63 = vadd.f32 %v2325_v60, %v1552_v61  ;;  %v2573_v0 = vpop.f32.mrb[13].mxu0 }
0x1157   :  { %2780 = vtanh.f32 %v1556_v63  ;;  %v2327_v2 = vmul.f32 -1.442695, %v1556_v63 }
0x1159   :  { %2782 = vpow2.f32 %v2327_v2 }
0x1161   :  { %v2781_v1 = vpop.eup %2780 }
0x1162   :  { %1566 = vrot.lane.b32.xlu0 %v2781_v1, %s2853_s14 }
0x1163   :  { %v2783_v6 = vpop.eup %2782 }
0x1164   :  { %v1560_v3 = vadd.f32 1.0, %v2783_v6 }
0x1166   :  { %2784 = vrcp.f32 %v1560_v3 }
0x1170   :  { %v2785_v4 = vpop.eup %2784 }
0x1171   :  { %v1564_v9 = vmul.f32 %v2785_v4, %v1337_v55 }
0x11d4   :  { %v1567_v7 = vpop.permute.xlu0 %1566 }
0x11d5   :  { %v1569_v10 = vmul.f32 %v2785_v4, %v1567_v7 }
0x11d7   :  { %1571 = vrot.lane.b32.xlu1 %v1569_v10, %s2854_s15 }
0x1249   :  { %v1572_v11 = vpop.permute.xlu1 %1571 }
0x124a   :  { %v1574_v12 = vadd.f32 %v1572_v11, %v1564_v9  ;;  %v3214_v9 = vld [vmem:[%s3402_s4] ss:$0 sm:$0xff] }
0x124c   :  { %2786 = vtanh.f32 %v1574_v12 }
0x1256   :  { %v2787_v13 = vpop.eup %2786 }
0x1257   :  { %1577 = vrot.lane.b32.xlu0 %v2787_v13, %s2853_s14 }
0x12c9   :  { %v1578_v14 = vpop.permute.xlu0 %1577 }
0x12ca   :  { %v3069_v15 = vmul.f32 %v2785_v4, %v1578_v14  ;;  %v244_v14 = vlaneseq }
0x12cc   :  { %1719 = vrot.lane.b32.xlu1 %v3069_v15, %s2854_s15 }
0x133e   :  { %v1720_v16 = vpop.permute.xlu1 %1719 }
0x133f   :  { %2594 = vmatmul.mubr.msk.f32.vlgmr.msra.gmra.mrb[14].mxu0 %vm55_vm1, %v1720_v16 }
0x1412   :  { %v1789_v19 = vpop.f32.mrb[14].mxu0 }
0x1413   :  { %v1793_v21 = vadd.f32 %v2330_v18, %v1789_v19  ;;  %v2595_v22 = vpop.f32.mrb[15].mxu0 }
0x1415   :  { %2788 = vtanh.f32 %v1793_v21  ;;  %v2332_v29 = vmul.f32 -1.442695, %v1793_v21 }
0x1417   :  { %2790 = vpow2.f32 %v2332_v29 }
0x141f   :  { %v2789_v23 = vpop.eup %2788 }
0x1420   :  { %1803 = vrot.lane.b32.xlu0 %v2789_v23, %s2853_s14 }
0x1421   :  { %v2791_v30 = vpop.eup %2790 }
0x1422   :  { %v1797_v31 = vadd.f32 1.0, %v2791_v30 }
0x1424   :  { %157 = vperm.xlu0 %2730, %v154_v24   ;;  %2792 = vrcp.f32 %v1797_v31 }
0x1428   :  { %874 = vperm.xlu0 %2730, %v2313_v25  }
0x142c   :  { %1348 = vperm.xlu0 %2730, %v2323_v27  }
0x142e   :  { %v2793_v35 = vpop.eup %2792 }
0x142f   :  { %v1801_v49 = vmul.f32 %v2793_v35, %v1574_v12 }
0x1430   :  { %1822 = vperm.xlu0 %2730, %v2333_v28  }
0x1492   :  { %v1804_v36 = vpop.permute.xlu0 %1803 }
0x1493   :  { %v1806_v37 = vmul.f32 %v2793_v35, %v1804_v36 }
0x1495   :  { %1808 = vrot.lane.b32.xlu1 %v1806_v37, %s2854_s15 }
0x1499   :  { %400 = vperm.xlu1 %2731, %v2303_v42  }
0x149d   :  { %637 = vperm.xlu1 %2731, %v2308_v43  }
0x14a1   :  { %1111 = vperm.xlu1 %2731, %v2318_v45  }
0x14a3   :  { %v158_v47 = vpop.permute.xlu0 %157 }
0x14a4   :  { %v3124_v48 = vmul.f32 %v158_v47, %v2968_v26 }
0x14a5   :  { %1585 = vperm.xlu1 %2731, %v2328_v46  }
0x14a6   :  { %168 = vrot.lane.b32.xlu0 %v3124_v48, %s2854_s15 }
0x14a7   :  { %v875_v51 = vpop.permute.xlu0 %874 }
0x14a8   :  { %v3140_v60 = vmul.f32 %v875_v51, %v3019_v20 }
0x14ab   :  { %v1349_v53 = vpop.permute.xlu0 %1348 }
0x14ac   :  { %v3152_v63 = vmul.f32 %v1349_v53, %v3053_v58 }
0x14af   :  { %v1823_v54 = vpop.permute.xlu0 %1822 }
0x1507   :  { %v1809_v50 = vpop.permute.xlu1 %1808 }
0x1508   :  { %v1811_v52 = vadd.f32 %v1809_v50, %v1801_v49 }
0x150a   :  { %2794 = vtanh.f32 %v1811_v52 }
0x1514   :  { %v2795_v55 = vpop.eup %2794 }
0x1515   :  { %1814 = vrot.lane.b32.xlu1 %v2795_v55, %s2853_s14 }
0x1518   :  { %v169_v56 = vpop.permute.xlu0 %168  ;;  %v401_v57 = vpop.permute.xlu1 %400 }
0x1519   :  { %v3130_v59 = vmul.f32 %v401_v57, %v2985_v44  ;;  %2451 = vmatmul.mubr.msk.f32.vlgmr.msra.gmra.mrb[0].mxu1 %vm55_vm1, %v169_v56 }
0x151a   :  { %2638 = vmatpush3.bf16.msra.mxu1 %v3096_v34  ;;  %2472 = vmatprep.mubr.msk.f32.mxu1 %vm2851_vm0, %v2852_v8 }
0x151b   :  { %405 = vrot.lane.b32.xlu1 %v3130_v59, %s2854_s15  ;;  %2639 = vmatprep.subr.bf16.mxu1 %v2850_v5 }
0x151c   :  { %v638_v26 = vpop.permute.xlu1 %637 }
0x151d   :  { %v3143_v61 = vmul.f32 %v638_v26, %v3002_v62 }
0x151e   :  { %2641 = vmatpush3.bf16.msra.mxu1 %v3106_v41 }
0x151f   :  { %642 = vrot.lane.b32.xlu0 %v3143_v61, %s2854_s15  ;;  %879 = vrot.lane.b32.xlu1 %v3140_v60, %s2854_s15 }
0x1520   :  { %v1112_v44 = vpop.permute.xlu1 %1111  ;;  %2648 = vmatprep.subr.bf16.mxu1 %v2850_v5 }
0x1521   :  { %v3155_v20 = vmul.f32 %v1112_v44, %v3036_v39 }
0x1523   :  { %1116 = vrot.lane.b32.xlu0 %v3155_v20, %s2854_s15  ;;  %1353 = vrot.lane.b32.xlu1 %v3152_v63, %s2854_s15 }
0x1524   :  { %v1586_v62 = vpop.permute.xlu1 %1585 }
0x1525   :  { %v3162_v0 = vmul.f32 %v1586_v62, %v3069_v15  ;;  %v3218_v15 = vshrl.u32 %v244_v14, 7 }
0x1527   :  { %1590 = vrot.lane.b32.xlu0 %v3162_v0, %s2854_s15  ;;  %v3225_v19 = vsub.s32 1, %v3218_v15 }
0x1587   :  { %v1815_v1 = vpop.permute.xlu1 %1814 }
0x1588   :  { %v1817_v2 = vmul.f32 %v2793_v35, %v1815_v1 }
0x158a   :  { %v3166_v58 = vmul.f32 %v1823_v54, %v1817_v2 }
0x158c   :  { %1827 = vrot.lane.b32.xlu1 %v3166_v58, %s2854_s15 }
0x158d   :  { %v406_v39 = vpop.permute.xlu1 %405 }
0x158e   :  { %2473 = vmatmul.mubr.msk.f32.vlgmr.msra.gmra.mrb[2].mxu1 %vm55_vm1, %v406_v39 }
0x158f   :  { %2650 = vmatpush3.bf16.msra.mxu1 %v3096_v34  ;;  %2494 = vmatprep.mubr.msk.f32.mxu1 %vm2851_vm0, %v2852_v8 }
0x1590   :  { %2651 = vmatprep.subr.bf16.mxu1 %v2850_v5 }
0x1591   :  { %v643_v6 = vpop.permute.xlu0 %642  ;;  %v880_v3 = vpop.permute.xlu1 %879 }
0x1593   :  { %2653 = vmatpush3.bf16.msra.mxu1 %v3106_v41 }
0x1594   :  { %2660 = vmatprep.subr.bf16.mxu1 %v2850_v5 }
0x1595   :  { %v1117_v4 = vpop.permute.xlu0 %1116  ;;  %v1354_v7 = vpop.permute.xlu1 %1353 }
0x1596   :  { %2495 = vmatmul.mubr.msk.f32.vlgmr.msra.gmra.mrb[4].mxu1 %vm55_vm1, %v643_v6 }
0x1597   :  { %2662 = vmatpush3.bf16.msra.mxu1 %v3096_v34  ;;  %2516 = vmatprep.mubr.msk.f32.mxu1 %vm2851_vm0, %v2852_v8 }
0x1598   :  { %2663 = vmatprep.subr.bf16.mxu1 %v2850_v5 }
0x1599   :  { %v1591_v10 = vpop.permute.xlu0 %1590 }
0x159b   :  { %2665 = vmatpush3.bf16.msra.mxu1 %v3106_v41 }
0x159c   :  { %2672 = vmatprep.subr.bf16.mxu1 %v2850_v5 }
0x159e   :  { %2517 = vmatmul.mubr.msk.f32.vlgmr.msra.gmra.mrb[6].mxu1 %vm55_vm1, %v880_v3 }
0x159f   :  { %2674 = vmatpush3.bf16.msra.mxu1 %v3096_v34  ;;  %2538 = vmatprep.mubr.msk.f32.mxu1 %vm2851_vm0, %v2852_v8 }
0x15a0   :  { %2675 = vmatprep.subr.bf16.mxu1 %v2850_v5 }
0x15a3   :  { %2677 = vmatpush3.bf16.msra.mxu1 %v3106_v41 }
0x15a4   :  { %2684 = vmatprep.subr.bf16.mxu1 %v2850_v5 }
0x15a6   :  { %2539 = vmatmul.mubr.msk.f32.vlgmr.msra.gmra.mrb[8].mxu1 %vm55_vm1, %v1117_v4 }
0x15a7   :  { %2686 = vmatpush3.bf16.msra.mxu1 %v3096_v34  ;;  %2560 = vmatprep.mubr.msk.f32.mxu1 %vm2851_vm0, %v2852_v8 }
0x15a8   :  { %2687 = vmatprep.subr.bf16.mxu1 %v2850_v5 }
0x15ab   :  { %2689 = vmatpush3.bf16.msra.mxu1 %v3106_v41 }
0x15ac   :  { %2696 = vmatprep.subr.bf16.mxu1 %v2850_v5 }
0x15ae   :  { %2561 = vmatmul.mubr.msk.f32.vlgmr.msra.gmra.mrb[10].mxu1 %vm55_vm1, %v1354_v7 }
0x15af   :  { %2698 = vmatpush3.bf16.msra.mxu1 %v3096_v34  ;;  %2582 = vmatprep.mubr.msk.f32.mxu1 %vm2851_vm0, %v2852_v8 }
0x15b0   :  { %2699 = vmatprep.subr.bf16.mxu1 %v2850_v5 }
0x15b3   :  { %2701 = vmatpush3.bf16.msra.mxu1 %v3106_v41 }
0x15b4   :  { %2708 = vmatprep.subr.bf16.mxu1 %v2850_v5 }
0x15b6   :  { %2583 = vmatmul.mubr.msk.f32.vlgmr.msra.gmra.mrb[12].mxu1 %vm55_vm1, %v1591_v10 }
0x15b7   :  { %2710 = vmatpush3.bf16.msra.mxu1 %v3096_v34  ;;  %2604 = vmatprep.mubr.msk.f32.mxu1 %vm2851_vm0, %v2852_v8 }
0x15b8   :  { %2711 = vmatprep.subr.bf16.mxu1 %v2850_v5  ;;  %v3221_v5 = vsub.s32 0, %v3218_v15 }
0x15bb   :  { %2713 = vmatpush3.bf16.msra.mxu1 %v3106_v41 }
0x15ec   :  { %v238_v11 = vpop.f32.mrb[0].mxu1 }
0x15ed   :  { %v239_v12 = vadd.f32 %v3214_v9, %v238_v11  ;;  %v2452_v13 = vpop.f32.mrb[1].mxu1  ;;  %v2856_v11 = vmov 1966171168  }
0x15ef   :  { %2796 = vtanh.f32 %v239_v12  ;;  %v259_v12 = vunpack.c.l.s4 %v2856_v11 }
0x15f9   :  { %v2797_v16 = vpop.eup %2796 }
0x15fa   :  { %v243_v17 = vand.u32 2147483647, %v2797_v16  ;;  %v260_v16 = vunpack.c.0.s8 %v259_v12 }
0x15fc   :  { %v247_v18 = vrot.slane %v243_v17, %v3221_v5  ;;  %v254_v22 = vrot.slane %v243_v17, %v3225_v19 }
0x15fe   :  { %249 = vbcast.lane.b32.xlu0 %v247_v18, 256  ;;  %v1828_v21 = vpop.permute.xlu1 %1827 }
0x15ff   :  { %2605 = vmatmul.mubr.msk.f32.vlgmr.msra.gmra.mrb[14].mxu1 %vm55_vm1, %v1828_v21  ;;  %v3249_v21 = vsub.s32 %v260_v16, %v3218_v15 }
0x1602   :  { %256 = vbcast.lane.b32.xlu0 %v254_v22, 256  ;;  %v264_v22 = vrot.slane %v3124_v48, %v3249_v21  ;;  %v1956_v48 = vld [vmem:[%s3403_s5 + $0x18] sm:$0xff] }
0x1661   :  { %v475_v23 = vpop.f32.mrb[2].mxu1 }
0x1662   :  { %v476_v24 = vadd.f32 %v3214_v9, %v475_v23  ;;  %v2474_v25 = vpop.f32.mrb[3].mxu1  ;;  %v1953_v23 = vld [vmem:[%s3403_s5] sm:$0xff] }
0x1663   :  { %v501_v25 = vrot.slane %v3130_v59, %v3249_v21 }
0x1664   :  { %2798 = vtanh.f32 %v476_v24  ;;  %v1954_v24 = vld [vmem:[%s3403_s5 + $0x8] sm:$0xff] }
0x1669   :  { %v712_v27 = vpop.f32.mrb[4].mxu1 }
0x166a   :  { %v713_v28 = vadd.f32 %v3214_v9, %v712_v27  ;;  %v2496_v29 = vpop.f32.mrb[5].mxu1  ;;  %v2714_v27 = vpack.c.bf16 %v1954_v24, %v1953_v23 }
0x166c   :  { %2800 = vtanh.f32 %v713_v28  ;;  %2715 = vmatprep.subr.bf16.mxu0 %v2714_v27 }
0x166d   :  { %2717 = vmatpush3.bf16.msra.mxu0 %v2714_v27 }
0x166e   :  { %v2799_v30 = vpop.eup %2798 }
0x166f   :  { %v480_v31 = vand.u32 2147483647, %v2799_v30  ;;  %v265_v30 = vcombine.high %v264_v22, %v264_v22 }
0x1670   :  { %v250_v59 = vpop.permute.xlu0 %249 }
0x1671   :  { %v949_v32 = vpop.f32.mrb[6].mxu1  ;;  %v484_v33 = vrot.slane %v480_v31, %v3221_v5  ;;  %v491_v36 = vrot.slane %v480_v31, %v3225_v19  ;;  %v272_v31 = vrot.slane %v264_v22, %v3249_v21 }
0x1672   :  { %v950_v34 = vadd.f32 %v3214_v9, %v949_v32  ;;  %v2518_v35 = vpop.f32.mrb[7].mxu1  ;;  %v502_v32 = vcombine.high %v501_v25, %v501_v25 }
0x1673   :  { %486 = vbcast.lane.b32.xlu1 %v484_v33, 256  ;;  %v738_v33 = vrot.slane %v3143_v61, %v3249_v21  ;;  %v509_v35 = vrot.slane %v501_v25, %v3249_v21 }
0x1674   :  { %2802 = vtanh.f32 %v950_v34  ;;  %v516_v61 = vrot.slane %v502_v32, %v3249_v21 }
0x1676   :  { %v2801_v37 = vpop.eup %2800 }
0x1677   :  { %493 = vbcast.lane.b32.xlu1 %v491_v36, 256  ;;  %v717_v38 = vand.u32 2147483647, %v2801_v37 }
0x1679   :  { %v1186_v40 = vpop.f32.mrb[8].mxu1  ;;  %v721_v41 = vrot.slane %v717_v38, %v3221_v5  ;;  %v728_v42 = vrot.slane %v717_v38, %v3225_v19  ;;  %v283_v38 = vrot.slane %v272_v31, %v3221_v5 }
0x167a   :  { %v1187_v43 = vadd.f32 %v3214_v9, %v1186_v40  ;;  %v2540_v45 = vpop.f32.mrb[9].mxu1  ;;  %v279_v40 = vrot.slane %v265_v30, %v3249_v21 }
0x167b   :  { %723 = vbcast.lane.b32.xlu0 %v721_v41, 256  ;;  %730 = vbcast.lane.b32.xlu1 %v728_v42, 256  ;;  %v739_v41 = vcombine.high %v738_v33, %v738_v33  ;;  %v520_v42 = vrot.slane %v509_v35, %v3221_v5  ;;  %v290_v45 = vmul.f32 %v283_v38, %v250_v59 }
0x167c   :  { %2804 = vtanh.f32 %v1187_v43 }
0x167e   :  { %v2803_v46 = vpop.eup %2802 }
0x167f   :  { %v954_v47 = vand.u32 2147483647, %v2803_v46 }
0x1681   :  { %v1423_v49 = vpop.f32.mrb[10].mxu1  ;;  %v965_v50 = vrot.slane %v954_v47, %v3225_v19  ;;  %v958_v51 = vrot.slane %v954_v47, %v3221_v5  ;;  %v287_v47 = vrot.slane %v279_v40, %v3221_v5 }
0x1682   :  { %v1424_v52 = vadd.f32 %v3214_v9, %v1423_v49  ;;  %v2562_v53 = vpop.f32.mrb[11].mxu1  ;;  %v257_v49 = vpop.permute.xlu0 %256 }
0x1683   :  { %967 = vbcast.lane.b32.xlu1 %v965_v50, 256  ;;  %960 = vbcast.lane.b32.xlu0 %v958_v51, 256  ;;  %v524_v51 = vrot.slane %v516_v61, %v3221_v5  ;;  %v753_v53 = vrot.slane %v739_v41, %v3249_v21 }
0x1684   :  { %2806 = vtanh.f32 %v1424_v52  ;;  %v746_v52 = vrot.slane %v738_v33, %v3249_v21 }
0x1686   :  { %v2805_v54 = vpop.eup %2804 }
0x1687   :  { %v1191_v55 = vand.u32 2147483647, %v2805_v54 }
0x1689   :  { %v1660_v56 = vpop.f32.mrb[12].mxu1  ;;  %v1202_v57 = vrot.slane %v1191_v55, %v3225_v19  ;;  %v1195_v26 = vrot.slane %v1191_v55, %v3221_v5  ;;  %v291_v55 = vmul.f32 %v287_v47, %v257_v49 }
0x168a   :  { %v1661_v44 = vadd.f32 %v3214_v9, %v1660_v56  ;;  %v2584_v62 = vpop.f32.mrb[13].mxu1 }
0x168b   :  { %1204 = vbcast.lane.b32.xlu1 %v1202_v57, 256  ;;  %1197 = vbcast.lane.b32.xlu0 %v1195_v26, 256  ;;  %v975_v57 = vrot.slane %v3140_v60, %v3249_v21  ;;  %v761_v62 = vrot.slane %v753_v53, %v3221_v5 }
0x168c   :  { %2808 = vtanh.f32 %v1661_v44  ;;  %v757_v44 = vrot.slane %v746_v52, %v3221_v5 }
0x168d   :  { %v983_v12 = vrot.slane %v975_v57, %v3249_v21 }
0x168e   :  { %v2807_v1 = vpop.eup %2806 }
0x168f   :  { %v1428_v2 = vand.u32 2147483647, %v2807_v1 }
0x1691   :  { %v1439_v39 = vrot.slane %v1428_v2, %v3225_v19  ;;  %v1432_v6 = vrot.slane %v1428_v2, %v3221_v5 }
0x1693   :  { %1441 = vbcast.lane.b32.xlu1 %v1439_v39, 256  ;;  %1434 = vbcast.lane.b32.xlu0 %v1432_v6, 256 }
0x1696   :  { %v2809_v3 = vpop.eup %2808 }
0x1697   :  { %v1665_v4 = vand.u32 2147483647, %v2809_v3  ;;  %v976_v3 = vcombine.high %v975_v57, %v975_v57  ;;  %v1923_v57 = vrot.slane %v3166_v58, %v3249_v21 }
0x1699   :  { %v1676_v7 = vrot.slane %v1665_v4, %v3225_v19  ;;  %v1669_v10 = vrot.slane %v1665_v4, %v3221_v5  ;;  %v1212_v4 = vrot.slane %v3155_v20, %v3249_v21  ;;  %v990_v60 = vrot.slane %v976_v3, %v3249_v21 }
0x169a   :  { %v1449_v20 = vrot.slane %v3152_v63, %v3249_v21 }
0x169b   :  { %1678 = vbcast.lane.b32.xlu1 %v1676_v7, 256  ;;  %1671 = vbcast.lane.b32.xlu0 %v1669_v10, 256  ;;  %v1213_v11 = vcombine.high %v1212_v4, %v1212_v4  ;;  %v1220_v22 = vrot.slane %v1212_v4, %v3249_v21 }
0x169c   :  { %v1450_v33 = vcombine.high %v1449_v20, %v1449_v20 }
0x169d   :  { %v1227_v23 = vrot.slane %v1213_v11, %v3249_v21  ;;  %v1231_v25 = vrot.slane %v1220_v22, %v3221_v5 }
0x169e   :  { %v1464_v63 = vrot.slane %v1450_v33, %v3249_v21 }
0x169f   :  { %v1235_v27 = vrot.slane %v1227_v23, %v3221_v5 }
0x16d2   :  { %v1897_v13 = vpop.f32.mrb[14].mxu1 }
0x16d3   :  { %v1898_v17 = vadd.f32 %v3214_v9, %v1897_v13  ;;  %v2606_v18 = vpop.f32.mrb[15].mxu1  ;;  %v1955_v9 = vld [vmem:[%s3403_s5 + $0x10] sm:$0xff] }
0x16d4   :  { %v2718_v28 = vpack.c.bf16 %v1956_v48, %v1955_v9  ;;  %v998_v18 = vrot.slane %v990_v60, %v3221_v5 }
0x16d5   :  { %2810 = vtanh.f32 %v1898_v17  ;;  %v994_v17 = vrot.slane %v983_v12, %v3221_v5 }
0x16d6   :  { %2719 = vmatprep.subr.bf16.mxu0 %v2718_v28 }
0x16d7   :  { %2721 = vmatpush3.bf16.msra.mxu0 %v2718_v28 }
0x16df   :  { %v2811_v29 = vpop.eup %2810 }
0x16e0   :  { %v1902_v34 = vand.u32 2147483647, %v2811_v29 }
0x16e2   :  { %v1913_v36 = vrot.slane %v1902_v34, %v3225_v19  ;;  %v1906_v37 = vrot.slane %v1902_v34, %v3221_v5  ;;  %v1686_v34 = vrot.slane %v3162_v0, %v3249_v21 }
0x16e4   :  { %1915 = vbcast.lane.b32.xlu1 %v1913_v36, 256  ;;  %1908 = vbcast.lane.b32.xlu0 %v1906_v37, 256  ;;  %v1687_v36 = vcombine.high %v1686_v34, %v1686_v34  ;;  %v1457_v37 = vrot.slane %v1449_v20, %v3249_v21  ;;  %v1694_v61 = vrot.slane %v1686_v34, %v3249_v21  ;;  %v2340_v20 = vld [vmem:[%s3405_s7] ss:$0 sm:$0xff] }
0x16e5   :  { %v487_v43 = vpop.permute.xlu1 %486 }
0x16e6   :  { %v527_v46 = vmul.f32 %v520_v42, %v487_v43  ;;  %v1468_v41 = vrot.slane %v1457_v37, %v3221_v5  ;;  %v1472_v42 = vrot.slane %v1464_v63, %v3221_v5  ;;  %v1701_v43 = vrot.slane %v1687_v36, %v3249_v21 }
0x16e7   :  { %v1705_v0 = vrot.slane %v1694_v61, %v3221_v5 }
0x16e8   :  { %v529_v50 = vadd.f32 %v527_v46, %v290_v45  ;;  %v1709_v47 = vrot.slane %v1701_v43, %v3221_v5 }
0x16e9   :  { %v494_v54 = vpop.permute.xlu1 %493 }
0x16ea   :  { %v528_v56 = vmul.f32 %v524_v51, %v494_v54 }
0x16ec   :  { %v530_v26 = vadd.f32 %v528_v56, %v291_v55 }
0x16ed   :  { %v724_v1 = vpop.permute.xlu0 %723  ;;  %v731_v2 = vpop.permute.xlu1 %730 }
0x16ee   :  { %v764_v39 = vmul.f32 %v757_v44, %v724_v1  ;;  %v765_v6 = vmul.f32 %v761_v62, %v731_v2  ;;  %v1931_v44 = vrot.slane %v1923_v57, %v3249_v21 }
0x16f0   :  { %v766_v7 = vadd.f32 %v764_v39, %v529_v50  ;;  %v767_v10 = vadd.f32 %v765_v6, %v530_v26  ;;  %v1924_v26 = vcombine.high %v1923_v57, %v1923_v57  ;;  %v1942_v1 = vrot.slane %v1931_v44, %v3221_v5 }
0x16f2   :  { %v1938_v62 = vrot.slane %v1924_v26, %v3249_v21  ;;  %v2335_v21 = vld [vmem:[%s3404_s6] ss:$0 sm:$0xff] }
0x16f4   :  { %v1946_v2 = vrot.slane %v1938_v62, %v3221_v5 }
0x16f5   :  { %v961_v13 = vpop.permute.xlu0 %960  ;;  %v968_v16 = vpop.permute.xlu1 %967 }
0x16f6   :  { %v1001_v24 = vmul.f32 %v994_v17, %v961_v13  ;;  %v1002_v9 = vmul.f32 %v998_v18, %v968_v16 }
0x16f8   :  { %v1003_v29 = vadd.f32 %v1001_v24, %v766_v7  ;;  %v1004_v30 = vadd.f32 %v1002_v9, %v767_v10 }
0x16fd   :  { %v1198_v48 = vpop.permute.xlu0 %1197  ;;  %v1205_v28 = vpop.permute.xlu1 %1204 }
0x16fe   :  { %v1238_v31 = vmul.f32 %v1231_v25, %v1198_v48  ;;  %v1239_v32 = vmul.f32 %v1235_v27, %v1205_v28 }
0x1700   :  { %v1240_v35 = vadd.f32 %v1238_v31, %v1003_v29  ;;  %v1241_v59 = vadd.f32 %v1239_v32, %v1004_v30  ;;  %v2341_v31 = vld [vmem:[#allocation2] ss:$0 sm:$0xff]  ;;  %v2092_v32 = vand.u32 127, %v244_v14 }
0x1702   :  { %v3333_v34 = vsub.s32 %v2092_v32, %v3218_v15 }
0x1705   :  { %v1435_v38 = vpop.permute.xlu0 %1434  ;;  %v1442_v40 = vpop.permute.xlu1 %1441 }
0x1706   :  { %v1475_v45 = vmul.f32 %v1468_v41, %v1435_v38  ;;  %v1476_v46 = vmul.f32 %v1472_v42, %v1442_v40 }
0x1708   :  { %v1477_v51 = vadd.f32 %v1475_v45, %v1240_v35  ;;  %v1478_v52 = vadd.f32 %v1476_v46, %v1241_v59 }
0x170d   :  { %v1672_v49 = vpop.permute.xlu0 %1671  ;;  %v1679_v50 = vpop.permute.xlu1 %1678 }
0x170e   :  { %v1712_v53 = vmul.f32 %v1705_v0, %v1672_v49  ;;  %v1713_v54 = vmul.f32 %v1709_v47, %v1679_v50 }
0x1710   :  { %v1714_v55 = vadd.f32 %v1712_v53, %v1477_v51  ;;  %v1715_v56 = vadd.f32 %v1713_v54, %v1478_v52 }
0x1756   :  { %v1909_v39 = vpop.permute.xlu0 %1908  ;;  %v1916_v6 = vpop.permute.xlu1 %1915 }
0x1757   :  { %v1949_v3 = vmul.f32 %v1942_v1, %v1909_v39  ;;  %v1950_v4 = vmul.f32 %v1946_v2, %v1916_v6 }
0x1759   :  { %v1951_v7 = vadd.f32 %v1949_v3, %v1714_v55  ;;  %v1952_v10 = vadd.f32 %v1950_v4, %v1715_v56 }
0x175b   :  { %1966 = vrot.lane.b32.xlu0 %v1951_v7, %s2854_s15  ;;  %1968 = vrot.lane.b32.xlu1 %v1952_v10, %s2854_s15 }
0x17cd   :  { %v1967_v58 = vpop.permute.xlu0 %1966  ;;  %v1969_v11 = vpop.permute.xlu1 %1968 }
0x17ce   :  { %2615 = vmatprep.mubr.msk.f32.mxu0 %vm55_vm1, %v1967_v58 }
0x17cf   :  { %2616 = vmatmul.mubr.msk.f32.vlgmr.msra.gmra.mrb[16].mxu0 %vm55_vm1, %v1969_v11 }
0x18a2   :  { %v2617_v12 = vpop.f32.mrb[16].mxu0 }
0x18a3   :  { %v2046_v60 = vadd.f32 %v2617_v12, %v2335_v21  ;;  %v2040_v13 = vpop.f32.mrb[17].mxu0 }
0x18a4   :  { %v2041_v16 = vadd.f32 %v2335_v21, %v2040_v13 }
0x18a5   :  { %v2339_v17 = vmul.f32 -1.442695, %v2046_v60 }
0x18a6   :  { %v2338_v18 = vmul.f32 -1.442695, %v2041_v16 }
0x18a7   :  { %2812 = vpow2.f32 %v2339_v17 }
0x18a8   :  { %2814 = vpow2.f32 %v2338_v18 }
0x18b1   :  { %v2813_v22 = vpop.eup %2812 }
0x18b2   :  { %v2815_v23 = vpop.eup %2814  ;;  %v2056_v24 = vadd.f32 1.0, %v2813_v22 }
0x18b3   :  { %v2055_v9 = vadd.f32 1.0, %v2815_v23 }
0x18b4   :  { %2816 = vrcp.f32 %v2056_v24 }
0x18b5   :  { %2818 = vrcp.f32 %v2055_v9 }
0x18be   :  { %v3323_v25 = vpop.eup %2816 }
0x18bf   :  { %v3325_v27 = vpop.eup %2818  ;;  %v2069_v48 = vmul.f32 %v3323_v25, %v2340_v20 }
0x18c0   :  { %v2068_v28 = vmul.f32 %v3325_v27, %v2340_v20 }
0x18c1   :  { %v2074_v29 = vsel %vm2070_vm2, %v2069_v48, 0.0 }
0x18c2   :  { %2075 = vadd.xlane.f32.xlu1 %v2074_v29  ;;  %v2071_v30 = vsel %vm2070_vm2, %v2068_v28, 0.0 }
0x18c3   :  { %2072 = vadd.xlane.f32.xlu0 %v2071_v30 }
0x18d9   :  { %2084 = vperm.xlu0 %2730, %v2341_v31  }
0x194f   :  { %v2076_v35 = vpop.xlane.xlu1 %2075 }
0x1950   :  { %v2073_v33 = vpop.xlane.xlu0 %2072 }
0x1958   :  { %v2085_v59 = vpop.permute.xlu0 %2084 }
0x1959   :  { %v3335_v36 = vadd.f32 %v2085_v59, %v2073_v33  ;;  %v3337_v37 = vadd.f32 %v2085_v59, %v2076_v35  ;;  %v2343_v59 = vld [vmem:[%s3407_s9] ss:$0 sm:$0xff] }
0x195b   :  { %v2096_v63 = vrot.slane %v3335_v36, %v3333_v34  ;;  %v2100_v38 = vrot.slane %v3337_v37, %v3333_v34 }
0x195d   :  { %v2102_v14 = vsel %vm2101_vm3, %v2100_v38, %v2096_v63 }
0x195e   :  { %v2105_v40 = vsel %vm2104_vm4, %v2102_v14, -inf }
0x195f   :  { %2106 = vmax.xlane.f32.xlu1 %v2105_v40 }
0x1970   :  { %2184 = vbcast.lane.b32.xlu1 %v2092_v32, 256 }
0x19ec   :  { %v3345_v15 = vpop.xlane.xlu1 %2106 }
0x19ed   :  { %v2112_v41 = vrot.slane %v3345_v15, %v3221_v5  ;;  %v2116_v42 = vrot.slane %v3345_v15, %v3225_v19 }
0x19ef   :  { %vm2181_vm5 = vcmp.eq.f32.partialorder %v3335_v36, %v2112_v41  ;;  %vm2182_vm6 = vcmp.eq.f32.partialorder %v3337_v37, %v2116_v42  ;;  %v2120_v53 = vsub.f32 %v3337_v37, %v2116_v42  ;;  %v2119_v1 = vsub.f32 %v3335_v36, %v2112_v41 }
0x19f0   :  { %v2185_v61 = vpop.permute.xlu1 %2184 }
0x19f1   :  { %v2186_v43 = vsel %vm2181_vm5, %v2185_v61, 8  ;;  %v2187_v45 = vsel %vm2182_vm6, %v2185_v61, 8  ;;  %v2123_v55 = vmul.f32 1.442695, %v2120_v53  ;;  %v2121_v2 = vmul.f32 1.442695, %v2119_v1 }
0x19f2   :  { %2189 = vperm.xlu0 %2730, %v2186_v43  }
0x19f3   :  { %2820 = vpow2.f32 %v2123_v55 }
0x19f4   :  { %2822 = vpow2.f32 %v2121_v2 }
0x19f6   :  { %2192 = vperm.xlu0 %2730, %v2187_v45  }
0x19fd   :  { %v2821_v56 = vpop.eup %2820 }
0x19fe   :  { %v2823_v39 = vpop.eup %2822 }
0x1a71   :  { %v2190_v46 = vpop.permute.xlu0 %2189 }
0x1a72   :  { %v2197_v47 = vrot.slane %v2190_v46, %v3333_v34 }
0x1a75   :  { %v2193_v0 = vpop.permute.xlu0 %2192 }
0x1a76   :  { %v2201_v49 = vrot.slane %v2193_v0, %v3333_v34 }
0x1a78   :  { %v2202_v50 = vsel %vm2101_vm3, %v2201_v49, %v2197_v47 }
0x1a79   :  { %v2203_v51 = vsel %vm2104_vm4, %v2202_v50, 2147483647 }
0x1a7a   :  { %v2205_v52 = vshra.s32 %v2203_v51, 16  ;;  %v2204_v57 = vand.u32 65535, %v2203_v51 }
0x1a7c   :  { %v2207_v54 = vcvt.s32.f32 %v2205_v52  ;;  %v2206_v44 = vcvt.s32.f32 %v2204_v57  ;;  %v2344_v52 = vld [vmem:[#allocation3] ss:$0 sm:$0xff] }
0x1a7e   :  { %2208 = vmin.xlane.f32.xlu1 %v2207_v54 }
0x1a8f   :  { %2131 = vperm.xlu1 %2731, %v2821_v56  }
0x1b0b   :  { %v2209_v26 = vpop.xlane.xlu1 %2208 }
0x1b0c   :  { %vm2210_vm7 = vcmp.eq.f32.partialorder %v2207_v54, %v2209_v26  ;;  %v2215_v6 = vcvt.f32.s32 %v2209_v26 }
0x1b0d   :  { %v2211_v62 = vsel %vm2210_vm7, %v2206_v44, inf }
0x1b0e   :  { %2212 = vmin.xlane.f32.xlu0 %v2211_v62  ;;  %v2216_v4 = vshll.u32 %v2215_v6, 16 }
0x1b0f   :  { %v2132_v58 = vpop.permute.xlu1 %2131 }
0x1b10   :  { %v2140_v60 = vrot.slane %v2132_v58, %v3333_v34 }
0x1b24   :  { %2128 = vperm.xlu0 %2730, %v2823_v39  }
0x1b9b   :  { %v2213_v3 = vpop.xlane.xlu0 %2212 }
0x1b9c   :  { %v2214_v7 = vcvt.f32.s32 %v2213_v3 }
0x1b9e   :  { %v2217_v10 = vadd.s32 %v2216_v4, %v2214_v7 }
0x1ba0   :  { %vm2218_vm8 = vcmp.eq.s32.totalorder %v2092_v32, %v2217_v10 }
0x1ba1   :  { %v2342_v11 = vsel %vm2218_vm8, 1.0, %v2852_v8 }
0x1ba2   :  { %v2231_v21 = vrot.slane %v2342_v11, %v3225_v19  ;;  %v2224_v16 = vrot.slane %v2342_v11, %v3221_v5 }
0x1ba3   :  { %v2129_v12 = vpop.permute.xlu0 %2128 }
0x1ba4   :  { %v2136_v13 = vrot.slane %v2129_v12, %v3333_v34  ;;  %2233 = vbcast.lane.b32.xlu0 %v2231_v21, 256 }
0x1ba6   :  { %v2141_v17 = vsel %vm2101_vm3, %v2140_v60, %v2136_v13 }
0x1ba7   :  { %v2143_v18 = vsel %vm2104_vm4, %v2141_v17, 0.0 }
0x1ba8   :  { %2226 = vbcast.lane.b32.xlu0 %v2224_v16, 256  ;;  %2144 = vadd.xlane.f32.xlu1 %v2143_v18 }
0x1c16   :  { %v2234_v22 = vpop.permute.xlu0 %2233 }
0x1c17   :  { %v2236_v23 = vmul.f32 %v3323_v25, %v2234_v22 }
0x1c19   :  { %v2244_v8 = vsel %vm2070_vm2, %v2236_v23, 0.0 }
0x1c1a   :  { %v2245_v24 = vrot.slane %v2244_v8, 4  ;;  %v2227_v9 = vpop.permute.xlu0 %2226 }
0x1c1b   :  { %v2235_v20 = vmul.f32 %v3325_v27, %v2227_v9 }
0x1c1c   :  { %v2246_v48 = vadd.f32 %v2245_v24, %v2244_v8 }
0x1c1d   :  { %v2237_v28 = vsel %vm2070_vm2, %v2235_v20, 0.0 }
0x1c1e   :  { %v2247_v29 = vrot.slane %v2246_v48, 2  ;;  %v2238_v30 = vrot.slane %v2237_v28, 4 }
0x1c20   :  { %v2248_v31 = vadd.f32 %v2247_v29, %v2246_v48  ;;  %v2239_v32 = vadd.f32 %v2238_v30, %v2237_v28 }
0x1c22   :  { %v2249_v33 = vrot.slane %v2248_v31, 1  ;;  %v2240_v35 = vrot.slane %v2239_v32, 2 }
0x1c24   :  { %v2250_v25 = vadd.f32 %v2249_v33, %v2248_v31  ;;  %v2241_v63 = vadd.f32 %v2240_v35, %v2239_v32 }
0x1c26   :  { %v2242_v38 = vrot.slane %v2241_v63, 1  ;;  %v2259_v14 = vmul.f32 %v2343_v59, %v2250_v25 }
0x1c28   :  { %v2243_v40 = vadd.f32 %v2242_v38, %v2241_v63  ;;  %v2262_v27 = vrot.slane %v2259_v14, 7 }
0x1c2a   :  { %v2258_v41 = vmul.f32 %v2343_v59, %v2243_v40 }
0x1c2c   :  { %v2263_v42 = vsel %vm2101_vm3, %v2262_v27, %v2258_v41 }
0x1c2d   :  { %v2266_v61 = vsel %vm2265_vm9, %v2263_v42, 0.0 }
0x1c2e   :  { %2267 = vadd.xlane.f32.xlu0 %v2266_v61 }
0x1c35   :  { %v2145_v43 = vpop.xlane.xlu1 %2144 }
0x1c36   :  { %2824 = vlog2.f32 %v2145_v43 }
0x1c40   :  { %v2825_v45 = vpop.eup %2824 }
0x1c41   :  { %v2147_v46 = vmul.f32 0.6931472, %v2825_v45 }
0x1c43   :  { %v2148_v0 = vadd.f32 %v2147_v46, %v3345_v15 }
0x1c45   :  { %v2153_v47 = vrot.slane %v2148_v0, %v3221_v5  ;;  %v2157_v49 = vrot.slane %v2148_v0, %v3225_v19 }
0x1c47   :  { %v2160_v50 = vsub.f32 %v3335_v36, %v2153_v47  ;;  %v2161_v51 = vsub.f32 %v3337_v37, %v2157_v49 }
0x1c49   :  { %2165 = vperm.xlu1 %2731, %v2160_v50   ;;  %2168 = vperm.xlu0 %2730, %v2161_v51  }
0x1cbb   :  { %v2268_v53 = vpop.xlane.xlu0 %2267 }
0x1cbc   :  { %v2276_v54 = vadd.f32 %v2344_v52, %v2268_v53 }
0x1cbe   :  { %2278 = vst.msk [vmem:[%s3408_s11] sm:$0x3] %vm2277_vm10, %v2276_v54 }
0x1cc8   :  { %v2166_v15 = vpop.permute.xlu1 %2165  ;;  %v2169_v5 = vpop.permute.xlu0 %2168 }
0x1cc9   :  { %v2173_v19 = vrot.slane %v2166_v15, %v3333_v34  ;;  %v2177_v36 = vrot.slane %v2169_v5, %v3333_v34 }
0x1ccb   :  { %v2178_v37 = vsel %vm2101_vm3, %v2177_v36, %v2173_v19 }
0x1ccc   :  { %2180 = vst.msk [vmem:[#allocation4] sm:$0x3] %vm2104_vm4, %v2178_v37 }
0x1ccd   :  { %2837 = shalt.err (!%p2834_p4)
}
0x1cce   :  { %s2838_s27 = scalar_lea.hbm %s3409_s12, 32 }
0x1ccf   :  { %p2839_p5 = scmp.ne.s32.totalorder %s3409_s12, %s2838_s27  ;;  %p2842_p6 = scmp.lt.u32.totalorder %s2838_s27, %s3409_s12 }
0x1cd1   :  { %p2844_p7 = pnand %p2842_p6, %p2839_p5 }
0x1cd3   :  { %2847 = shalt.err (!%p2844_p7)
}
0x1cd4   :  { %2290 = dma.vmem_to_hbm [thread:$0]  %s2288_s24, 32, %s3409_s12, [#allocation5]  }
0x1cd5   :  { %2848 = dma.done.wait [#allocation5], 32  }
0x1cd6   :  { %2849 = vsyncadd [#allocation5], 4294967264 }
0x1cd7   :  { %2296 = vsyncpa [#allocation5], 1 }

</bundles_post_ra>
